<compile_context>
chip_gen: v7x
topology: tpu7x:2x2x1
jax: 0.10.0
libtpu: 0.0.40
codegen_flags: <defaults>
</compile_context>

<pallas_src>
import math

import jax
import jax.numpy as jnp
from jax import lax
from jax.experimental import pallas as pl
from jax.experimental.pallas import tpu as pltpu


def _make_kernel(num_layers, nhead, head_dim, E, N, LN, SN):
    """LN = L*N query rows, SN = S*N key rows (seq-major 2-D layout)."""

    def kernel(x_ref, kv_ref, w_in_ref, w_post_ref, b_ref, out_ref):
        kv = kv_ref[...].astype(jnp.float32)            # (SN, E) keys/values source
        x = x_ref[...].astype(jnp.float32)              # (LN, E) carried prototypes

        # --- block-diagonal batch mask, generated in-kernel (no DMA channel) ---
        # Inputs are PyTorch seq-first (L,N,E)/(S,N,E) flattened seq-major, so the
        # batch index of row r is r % N (silently wrong if a caller passes
        # batch-first tensors).
        rb = lax.broadcasted_iota(jnp.int32, (LN, SN), 0) % N
        cb = lax.broadcasted_iota(jnp.int32, (LN, SN), 1) % N
        attn_bias = jnp.where(rb == cb, jnp.float32(0.0), jnp.float32(-1e30))

        # --- static unroll over decoder layers (n_dec is tiny) ---
        for layer in range(num_layers):
            w_in = w_in_ref[layer]                      # (E, 3E) = [Wq^T*scale | Wk^T | Wv^T]
            w_post = w_post_ref[layer]                  # (E, 3E) = [Wo^T | W1^T | W2^T]
            b = b_ref[layer]                            # (6, E)  = bq*scale, bk, bv, bo, b1, b2

            # fused, lane-dense input projections
            q = jnp.dot(x, w_in[:, 0:E],
                        preferred_element_type=jnp.float32) + b[0:1, :]
            kvp = jnp.dot(kv, w_in[:, E:3 * E],
                          preferred_element_type=jnp.float32)
            k = kvp[:, 0:E] + b[1:2, :]
            v = kvp[:, E:2 * E] + b[2:3, :]

            # multi-head attention; batch isolation via additive mask.
            # Head outputs are accumulated directly into the out-projection
            # (sublane slices of Wo^T) — no lane-shift concat.
            mha = jnp.broadcast_to(b[3:4, :], (LN, E)).astype(jnp.float32)
            for h in range(nhead):                      # static unroll (tiny head count)
                sl = slice(h * head_dim, (h + 1) * head_dim)
                s = jnp.dot(q[:, sl], k[:, sl].T,
                            preferred_element_type=jnp.float32) + attn_bias
                s = s - jnp.max(s, axis=-1, keepdims=True)
                p = jnp.exp(s)
                p = p * pl.reciprocal(jnp.sum(p, axis=-1, keepdims=True),
                                      approx=True)
                oh = jnp.dot(p, v[:, sl],
                             preferred_element_type=jnp.float32)      # (LN, hd)
                mha = mha + jnp.dot(oh, w_post[sl, 0:E],
                                    preferred_element_type=jnp.float32)

            # prt_refine: linear2(relu(linear1(mha))) + mha
            h1 = jnp.maximum(
                jnp.dot(mha, w_post[:, E:2 * E],
                        preferred_element_type=jnp.float32) + b[4:5, :], 0.0)
            ffn = jnp.dot(h1, w_post[:, 2 * E:3 * E],
                          preferred_element_type=jnp.float32) + b[5:6, :]
            x = ffn + mha                               # carried to next layer

        out_ref[...] = x.astype(out_ref.dtype)

    return kernel


def zsl_prt_dec_forward(vis_prt, vis_query, kparams, nhead):
    """Apply the whole zsl_prt_dec stack.

    vis_prt: (L, N, E), vis_query: (S, N, E) — PyTorch seq-first layout (required:
    the in-kernel %N batch mask assumes it).
    kparams: (w_in_all (n_dec,E,3E), w_post_all (n_dec,E,3E), b_all (n_dec,6,E)).
    """
    L, N, E = vis_prt.shape
    S = vis_query.shape[0]
    hd = E // nhead
    w_in_all, w_post_all, b_all = kparams
    n_dec = w_in_all.shape[0]

    # seq-major 2-D views: free reshapes, no transpose / extra HBM round trip
    x2d = vis_prt.reshape(L * N, E)
    kv2d = vis_query.reshape(S * N, E)

    vmem = pl.BlockSpec(memory_space=pltpu.MemorySpace.VMEM)

    out2d = pl.pallas_call(
        _make_kernel(n_dec, nhead, hd, E, N, L * N, S * N),
        out_shape=jax.ShapeDtypeStruct((L * N, E), vis_prt.dtype),
        in_specs=[vmem] * 5,      # x, kv, w_in_all, w_post_all, b_all
        out_specs=vmem,
    )(x2d, kv2d, w_in_all, w_post_all, b_all)

    return out2d.reshape(L, N, E)


def init_params(key, dim, nhead, n_dec):
    """Deterministic synthetic params for n_dec PrtAttLayers.

    Returns (kparams, raw_layers):
      kparams    — stacked, packed, kernel-layout weights (scale folded into Wq/bq)
      raw_layers — per-layer PyTorch-shaped tensors for the plain-JAX reference
    """
    hd = dim // nhead
    att_scale = 1.0 / math.sqrt(hd)
    sc = 1.0 / math.sqrt(dim)

    w_in_l, w_post_l, b_l, raw_layers = [], [], [], []
    for lk in jax.random.split(key, n_dec):
        ks = jax.random.split(lk, 8)
        in_proj_w = jax.random.normal(ks[0], (3 * dim, dim), jnp.float32) * sc
        in_proj_b = jax.random.normal(ks[1], (3 * dim,), jnp.float32) * 0.02
        out_w = jax.random.normal(ks[2], (dim, dim), jnp.float32) * sc
        out_b = jax.random.normal(ks[3], (dim,), jnp.float32) * 0.02
        w1 = jax.random.normal(ks[4], (dim, dim), jnp.float32) * sc
        b1 = jax.random.normal(ks[5], (dim,), jnp.float32) * 0.02
        w2 = jax.random.normal(ks[6], (dim, dim), jnp.float32) * sc
        b2 = jax.random.normal(ks[7], (dim,), jnp.float32) * 0.02

        wq, wk, wv = in_proj_w[:dim], in_proj_w[dim:2 * dim], in_proj_w[2 * dim:]
        bq, bk, bv = in_proj_b[:dim], in_proj_b[dim:2 * dim], in_proj_b[2 * dim:]

        # kernel layout: y = x @ W^T  ->  store transposed, packed lane-dense.
        # 1/sqrt(head_dim) folded into Wq^T and bq (free at pack time).
        w_in_l.append(jnp.concatenate([wq.T * att_scale, wk.T, wv.T], axis=1))   # (E, 3E)
        w_post_l.append(jnp.concatenate([out_w.T, w1.T, w2.T], axis=1))          # (E, 3E)
        b_l.append(jnp.stack([bq * att_scale, bk, bv, out_b, b1, b2], axis=0))   # (6, E)
        raw_layers.append((wq, bq, wk, bk, wv, bv, out_w, out_b, w1, b1, w2, b2))

    kparams = (jnp.stack(w_in_l, axis=0),      # (n_dec, E, 3E)
               jnp.stack(w_post_l, axis=0),    # (n_dec, E, 3E)
               jnp.stack(b_l, axis=0))         # (n_dec, 6, E)
    return kparams, raw_layers


def _reference_layer(vis_prt, vis_query, raw, nhead):
    """Plain-JAX replica of one PrtAttLayer.forward (eval mode)."""
    wq, bq, wk, bk, wv, bv, wo, bo, w1, b1, w2, b2 = raw
    L, N, E = vis_prt.shape
    S = vis_query.shape[0]
    hd = E // nhead
    q = vis_prt @ wq.T + bq
    k = vis_query @ wk.T + bk
    v = vis_query @ wv.T + bv

    def split(t, T):
        return t.reshape(T, N, nhead, hd).transpose(1, 2, 0, 3)   # (N, H, T, hd)

    qh, kh, vh = split(q, L), split(k, S), split(v, S)
    s = jnp.einsum('nhld,nhsd->nhls', qh, kh) / math.sqrt(hd)
    p = jax.nn.softmax(s, axis=-1)
    o = jnp.einsum('nhls,nhsd->nhld', p, vh)
    o = o.transpose(2, 0, 1, 3).reshape(L, N, E)
    mha = o @ wo.T + bo
    h1 = jnp.maximum(mha @ w1.T + b1, 0.0)
    return h1 @ w2.T + b2 + mha


def reference_forward(vis_prt, vis_query, raw_layers, nhead):
    x = vis_prt
    for raw in raw_layers:
        x = _reference_layer(x, vis_query, raw, nhead)
    return x


if __name__ == "__main__":
    dim, nhead = 32, 4      # dim % nhead == 0
    n_dec = 2               # decoder layers fused into one kernel
    L, S, N = 8, 16, 2      # prototypes, vis-query length, batch

    key = jax.random.PRNGKey(0)
    kp, kq, kw = jax.random.split(key, 3)
    vis_prt = jax.random.normal(kp, (L, N, dim), jnp.float32)
    vis_query = jax.random.normal(kq, (S, N, dim), jnp.float32)
    kparams, raw_layers = init_params(kw, dim, nhead, n_dec)

    fwd = jax.jit(zsl_prt_dec_forward, static_argnums=(3,))
    out = fwd(vis_prt, vis_query, kparams, nhead)
    out = jax.block_until_ready(out)

    ref = reference_forward(vis_prt, vis_query, raw_layers, nhead)
    assert out.shape == (L, N, dim)
    assert jnp.allclose(out, ref, atol=1e-2, rtol=1e-2), "mismatch vs JAX reference"

    print("KERNEL_OK")
</pallas_src>

<mosaic_0001>
module attributes {stable_mosaic.version = 11 : i64} {
  func.func @kernel(%arg0: memref<16x32xf32, #tpu.memory_space<vmem>>, %arg1: memref<32x32xf32, #tpu.memory_space<vmem>>, %arg2: memref<2x32x96xf32, #tpu.memory_space<vmem>>, %arg3: memref<2x32x96xf32, #tpu.memory_space<vmem>>, %arg4: memref<2x6x32xf32, #tpu.memory_space<vmem>>, %arg5: memref<16x32xf32, #tpu.memory_space<vmem>>) attributes {dimension_semantics = [], scalar_prefetch = 0 : i64, scratch_operands = 0 : i64, tpu.core_type = #tpu.core_type<tc>} {
    %c0 = arith.constant 0 : index
    %c0_0 = arith.constant 0 : index
    %0 = vector.load %arg1[%c0, %c0_0] : memref<32x32xf32, #tpu.memory_space<vmem>>, vector<32x32xf32>
    %c0_1 = arith.constant 0 : index
    %c0_2 = arith.constant 0 : index
    %1 = vector.load %arg0[%c0_1, %c0_2] : memref<16x32xf32, #tpu.memory_space<vmem>>, vector<16x32xf32>
    %2 = tpu.iota {dimensions = array<i32: 0>} : vector<16x32xi32>
    %c2_i32 = arith.constant 2 : i32
    %c0_i32 = arith.constant 0 : i32
    %3 = arith.cmpi eq, %c2_i32, %c0_i32 : i32
    %c1_i32 = arith.constant 1 : i32
    %4 = arith.select %3, %c1_i32, %c2_i32 : i32
    %5 = vector.broadcast %4 : i32 to vector<16x32xi32>
    %6 = arith.remsi %2, %5 : vector<16x32xi32>
    %c0_i32_3 = arith.constant 0 : i32
    %7 = vector.broadcast %c0_i32_3 : i32 to vector<16x32xi32>
    %8 = arith.cmpi ne, %6, %7 : vector<16x32xi32>
    %c0_i32_4 = arith.constant 0 : i32
    %9 = vector.broadcast %c0_i32_4 : i32 to vector<16x32xi32>
    %10 = arith.cmpi slt, %6, %9 : vector<16x32xi32>
    %c0_i32_5 = arith.constant 0 : i32
    %11 = arith.cmpi slt, %4, %c0_i32_5 : i32
    %12 = vector.broadcast %11 : i1 to vector<16x32xi1>
    %13 = vector.broadcast %12 : vector<16x32xi1> to vector<16x32xi1>
    %14 = arith.xori %10, %13 : vector<16x32xi1>
    %15 = arith.andi %14, %8 : vector<16x32xi1>
    %16 = vector.broadcast %4 : i32 to vector<16x32xi32>
    %17 = arith.addi %6, %16 : vector<16x32xi32>
    %18 = arith.select %15, %17, %6 : vector<16x32xi1>, vector<16x32xi32>
    %19 = tpu.iota {dimensions = array<i32: 1>} : vector<16x32xi32>
    %c2_i32_6 = arith.constant 2 : i32
    %c0_i32_7 = arith.constant 0 : i32
    %20 = arith.cmpi eq, %c2_i32_6, %c0_i32_7 : i32
    %c1_i32_8 = arith.constant 1 : i32
    %21 = arith.select %20, %c1_i32_8, %c2_i32_6 : i32
    %22 = vector.broadcast %21 : i32 to vector<16x32xi32>
    %23 = arith.remsi %19, %22 : vector<16x32xi32>
    %c0_i32_9 = arith.constant 0 : i32
    %24 = vector.broadcast %c0_i32_9 : i32 to vector<16x32xi32>
    %25 = arith.cmpi ne, %23, %24 : vector<16x32xi32>
    %c0_i32_10 = arith.constant 0 : i32
    %26 = vector.broadcast %c0_i32_10 : i32 to vector<16x32xi32>
    %27 = arith.cmpi slt, %23, %26 : vector<16x32xi32>
    %c0_i32_11 = arith.constant 0 : i32
    %28 = arith.cmpi slt, %21, %c0_i32_11 : i32
    %29 = vector.broadcast %28 : i1 to vector<16x32xi1>
    %30 = vector.broadcast %29 : vector<16x32xi1> to vector<16x32xi1>
    %31 = arith.xori %27, %30 : vector<16x32xi1>
    %32 = arith.andi %31, %25 : vector<16x32xi1>
    %33 = vector.broadcast %21 : i32 to vector<16x32xi32>
    %34 = arith.addi %23, %33 : vector<16x32xi32>
    %35 = arith.select %32, %34, %23 : vector<16x32xi1>, vector<16x32xi32>
    %36 = arith.cmpi eq, %18, %35 : vector<16x32xi32>
    %cst = arith.constant 0.000000e+00 : f32
    %cst_12 = arith.constant -1.000000e+30 : f32
    %37 = vector.broadcast %cst : f32 to vector<16x32xf32>
    %38 = vector.broadcast %cst_12 : f32 to vector<16x32xf32>
    %39 = arith.select %36, %37, %38 : vector<16x32xi1>, vector<16x32xf32>
    %c0_13 = arith.constant 0 : index
    %c0_14 = arith.constant 0 : index
    %c0_15 = arith.constant 0 : index
    %40 = vector.load %arg2[%c0_13, %c0_14, %c0_15] : memref<2x32x96xf32, #tpu.memory_space<vmem>>, vector<1x32x96xf32>
    %41 = vector.shape_cast %40 : vector<1x32x96xf32> to vector<32x96xf32>
    %c0_16 = arith.constant 0 : index
    %c0_17 = arith.constant 0 : index
    %c0_18 = arith.constant 0 : index
    %42 = vector.load %arg3[%c0_16, %c0_17, %c0_18] : memref<2x32x96xf32, #tpu.memory_space<vmem>>, vector<1x32x96xf32>
    %43 = vector.shape_cast %42 : vector<1x32x96xf32> to vector<32x96xf32>
    %c0_19 = arith.constant 0 : index
    %c0_20 = arith.constant 0 : index
    %c0_21 = arith.constant 0 : index
    %44 = vector.load %arg4[%c0_19, %c0_20, %c0_21] : memref<2x6x32xf32, #tpu.memory_space<vmem>>, vector<1x6x32xf32>
    %45 = vector.shape_cast %44 : vector<1x6x32xf32> to vector<6x32xf32>
    %46 = vector.extract_strided_slice %41 {offsets = [0, 0], sizes = [32, 32], strides = [1, 1]} : vector<32x96xf32> to vector<32x32xf32>
    %cst_22 = arith.constant dense<0.000000e+00> : vector<16x32xf32>
    %47 = tpu.matmul %1, %46, %cst_22 {dimension_numbers = #tpu.dot_dimension_numbers<[1], [0], [0], [1], [0, 0, 1, 1], [], []>} : vector<16x32xf32>, vector<32x32xf32>, vector<16x32xf32> -> vector<16x32xf32>
    %48 = vector.extract_strided_slice %45 {offsets = [0, 0], sizes = [1, 32], strides = [1, 1]} : vector<6x32xf32> to vector<1x32xf32>
    %49 = vector.broadcast %48 : vector<1x32xf32> to vector<16x32xf32>
    %50 = arith.addf %47, %49 : vector<16x32xf32>
    %51 = vector.extract_strided_slice %41 {offsets = [0, 32], sizes = [32, 64], strides = [1, 1]} : vector<32x96xf32> to vector<32x64xf32>
    %cst_23 = arith.constant dense<0.000000e+00> : vector<32x64xf32>
    %52 = tpu.matmul %0, %51, %cst_23 {dimension_numbers = #tpu.dot_dimension_numbers<[1], [0], [0], [1], [0, 0, 1, 1], [], []>} : vector<32x32xf32>, vector<32x64xf32>, vector<32x64xf32> -> vector<32x64xf32>
    %53 = vector.extract_strided_slice %52 {offsets = [0, 0], sizes = [32, 32], strides = [1, 1]} : vector<32x64xf32> to vector<32x32xf32>
    %54 = vector.extract_strided_slice %45 {offsets = [1, 0], sizes = [1, 32], strides = [1, 1]} : vector<6x32xf32> to vector<1x32xf32>
    %55 = vector.broadcast %54 : vector<1x32xf32> to vector<32x32xf32>
    %56 = arith.addf %53, %55 : vector<32x32xf32>
    %57 = vector.extract_strided_slice %52 {offsets = [0, 32], sizes = [32, 32], strides = [1, 1]} : vector<32x64xf32> to vector<32x32xf32>
    %58 = vector.extract_strided_slice %45 {offsets = [2, 0], sizes = [1, 32], strides = [1, 1]} : vector<6x32xf32> to vector<1x32xf32>
    %59 = vector.broadcast %58 : vector<1x32xf32> to vector<32x32xf32>
    %60 = arith.addf %57, %59 : vector<32x32xf32>
    %61 = vector.extract_strided_slice %45 {offsets = [3, 0], sizes = [1, 32], strides = [1, 1]} : vector<6x32xf32> to vector<1x32xf32>
    %62 = vector.shape_cast %61 : vector<1x32xf32> to vector<1x32xf32>
    %63 = vector.broadcast %62 : vector<1x32xf32> to vector<16x32xf32>
    %64 = vector.extract_strided_slice %50 {offsets = [0, 0], sizes = [16, 8], strides = [1, 1]} : vector<16x32xf32> to vector<16x8xf32>
    %65 = vector.extract_strided_slice %56 {offsets = [0, 0], sizes = [32, 8], strides = [1, 1]} : vector<32x32xf32> to vector<32x8xf32>
    %66 = tpu.transpose %65, [1, 0] : vector<32x8xf32> -> vector<8x32xf32>
    %cst_24 = arith.constant dense<0.000000e+00> : vector<16x32xf32>
    %67 = tpu.matmul %64, %66, %cst_24 {dimension_numbers = #tpu.dot_dimension_numbers<[1], [0], [0], [1], [0, 0, 1, 1], [], []>} : vector<16x8xf32>, vector<8x32xf32>, vector<16x32xf32> -> vector<16x32xf32>
    %68 = arith.addf %67, %39 : vector<16x32xf32>
    %cst_25 = arith.constant dense<0xFF800000> : vector<16xf32>
    %69 = vector.multi_reduction <maximumf>, %68, %cst_25 [1] : vector<16x32xf32> to vector<16xf32>
    %70 = vector.shape_cast %69 : vector<16xf32> to vector<16x1xf32>
    %71 = vector.broadcast %70 : vector<16x1xf32> to vector<16x32xf32>
    %72 = arith.subf %68, %71 : vector<16x32xf32>
    %73 = math.exp %72 : vector<16x32xf32>
    %cst_26 = arith.constant dense<0.000000e+00> : vector<16xf32>
    %74 = vector.multi_reduction <add>, %73, %cst_26 [1] : vector<16x32xf32> to vector<16xf32>
    %75 = vector.shape_cast %74 : vector<16xf32> to vector<16x1xf32>
    %76 = tpu.reciprocal %75 {approx = true} : vector<16x1xf32> -> vector<16x1xf32>
    %77 = vector.broadcast %76 : vector<16x1xf32> to vector<16x32xf32>
    %78 = arith.mulf %73, %77 : vector<16x32xf32>
    %79 = vector.extract_strided_slice %60 {offsets = [0, 0], sizes = [32, 8], strides = [1, 1]} : vector<32x32xf32> to vector<32x8xf32>
    %cst_27 = arith.constant dense<0.000000e+00> : vector<16x8xf32>
    %80 = tpu.matmul %78, %79, %cst_27 {dimension_numbers = #tpu.dot_dimension_numbers<[1], [0], [0], [1], [0, 0, 1, 1], [], []>} : vector<16x32xf32>, vector<32x8xf32>, vector<16x8xf32> -> vector<16x8xf32>
    %81 = vector.extract_strided_slice %43 {offsets = [0, 0], sizes = [8, 32], strides = [1, 1]} : vector<32x96xf32> to vector<8x32xf32>
    %cst_28 = arith.constant dense<0.000000e+00> : vector<16x32xf32>
    %82 = tpu.matmul %80, %81, %cst_28 {dimension_numbers = #tpu.dot_dimension_numbers<[1], [0], [0], [1], [0, 0, 1, 1], [], []>} : vector<16x8xf32>, vector<8x32xf32>, vector<16x32xf32> -> vector<16x32xf32>
    %83 = arith.addf %63, %82 : vector<16x32xf32>
    %84 = vector.extract_strided_slice %50 {offsets = [0, 8], sizes = [16, 8], strides = [1, 1]} : vector<16x32xf32> to vector<16x8xf32>
    %85 = vector.extract_strided_slice %56 {offsets = [0, 8], sizes = [32, 8], strides = [1, 1]} : vector<32x32xf32> to vector<32x8xf32>
    %86 = tpu.transpose %85, [1, 0] : vector<32x8xf32> -> vector<8x32xf32>
    %cst_29 = arith.constant dense<0.000000e+00> : vector<16x32xf32>
    %87 = tpu.matmul %84, %86, %cst_29 {dimension_numbers = #tpu.dot_dimension_numbers<[1], [0], [0], [1], [0, 0, 1, 1], [], []>} : vector<16x8xf32>, vector<8x32xf32>, vector<16x32xf32> -> vector<16x32xf32>
    %88 = arith.addf %87, %39 : vector<16x32xf32>
    %cst_30 = arith.constant dense<0xFF800000> : vector<16xf32>
    %89 = vector.multi_reduction <maximumf>, %88, %cst_30 [1] : vector<16x32xf32> to vector<16xf32>
    %90 = vector.shape_cast %89 : vector<16xf32> to vector<16x1xf32>
    %91 = vector.broadcast %90 : vector<16x1xf32> to vector<16x32xf32>
    %92 = arith.subf %88, %91 : vector<16x32xf32>
    %93 = math.exp %92 : vector<16x32xf32>
    %cst_31 = arith.constant dense<0.000000e+00> : vector<16xf32>
    %94 = vector.multi_reduction <add>, %93, %cst_31 [1] : vector<16x32xf32> to vector<16xf32>
    %95 = vector.shape_cast %94 : vector<16xf32> to vector<16x1xf32>
    %96 = tpu.reciprocal %95 {approx = true} : vector<16x1xf32> -> vector<16x1xf32>
    %97 = vector.broadcast %96 : vector<16x1xf32> to vector<16x32xf32>
    %98 = arith.mulf %93, %97 : vector<16x32xf32>
    %99 = vector.extract_strided_slice %60 {offsets = [0, 8], sizes = [32, 8], strides = [1, 1]} : vector<32x32xf32> to vector<32x8xf32>
    %cst_32 = arith.constant dense<0.000000e+00> : vector<16x8xf32>
    %100 = tpu.matmul %98, %99, %cst_32 {dimension_numbers = #tpu.dot_dimension_numbers<[1], [0], [0], [1], [0, 0, 1, 1], [], []>} : vector<16x32xf32>, vector<32x8xf32>, vector<16x8xf32> -> vector<16x8xf32>
    %101 = vector.extract_strided_slice %43 {offsets = [8, 0], sizes = [8, 32], strides = [1, 1]} : vector<32x96xf32> to vector<8x32xf32>
    %cst_33 = arith.constant dense<0.000000e+00> : vector<16x32xf32>
    %102 = tpu.matmul %100, %101, %cst_33 {dimension_numbers = #tpu.dot_dimension_numbers<[1], [0], [0], [1], [0, 0, 1, 1], [], []>} : vector<16x8xf32>, vector<8x32xf32>, vector<16x32xf32> -> vector<16x32xf32>
    %103 = arith.addf %83, %102 : vector<16x32xf32>
    %104 = vector.extract_strided_slice %50 {offsets = [0, 16], sizes = [16, 8], strides = [1, 1]} : vector<16x32xf32> to vector<16x8xf32>
    %105 = vector.extract_strided_slice %56 {offsets = [0, 16], sizes = [32, 8], strides = [1, 1]} : vector<32x32xf32> to vector<32x8xf32>
    %106 = tpu.transpose %105, [1, 0] : vector<32x8xf32> -> vector<8x32xf32>
    %cst_34 = arith.constant dense<0.000000e+00> : vector<16x32xf32>
    %107 = tpu.matmul %104, %106, %cst_34 {dimension_numbers = #tpu.dot_dimension_numbers<[1], [0], [0], [1], [0, 0, 1, 1], [], []>} : vector<16x8xf32>, vector<8x32xf32>, vector<16x32xf32> -> vector<16x32xf32>
    %108 = arith.addf %107, %39 : vector<16x32xf32>
    %cst_35 = arith.constant dense<0xFF800000> : vector<16xf32>
    %109 = vector.multi_reduction <maximumf>, %108, %cst_35 [1] : vector<16x32xf32> to vector<16xf32>
    %110 = vector.shape_cast %109 : vector<16xf32> to vector<16x1xf32>
    %111 = vector.broadcast %110 : vector<16x1xf32> to vector<16x32xf32>
    %112 = arith.subf %108, %111 : vector<16x32xf32>
    %113 = math.exp %112 : vector<16x32xf32>
    %cst_36 = arith.constant dense<0.000000e+00> : vector<16xf32>
    %114 = vector.multi_reduction <add>, %113, %cst_36 [1] : vector<16x32xf32> to vector<16xf32>
    %115 = vector.shape_cast %114 : vector<16xf32> to vector<16x1xf32>
    %116 = tpu.reciprocal %115 {approx = true} : vector<16x1xf32> -> vector<16x1xf32>
    %117 = vector.broadcast %116 : vector<16x1xf32> to vector<16x32xf32>
    %118 = arith.mulf %113, %117 : vector<16x32xf32>
    %119 = vector.extract_strided_slice %60 {offsets = [0, 16], sizes = [32, 8], strides = [1, 1]} : vector<32x32xf32> to vector<32x8xf32>
    %cst_37 = arith.constant dense<0.000000e+00> : vector<16x8xf32>
    %120 = tpu.matmul %118, %119, %cst_37 {dimension_numbers = #tpu.dot_dimension_numbers<[1], [0], [0], [1], [0, 0, 1, 1], [], []>} : vector<16x32xf32>, vector<32x8xf32>, vector<16x8xf32> -> vector<16x8xf32>
    %121 = vector.extract_strided_slice %43 {offsets = [16, 0], sizes = [8, 32], strides = [1, 1]} : vector<32x96xf32> to vector<8x32xf32>
    %cst_38 = arith.constant dense<0.000000e+00> : vector<16x32xf32>
    %122 = tpu.matmul %120, %121, %cst_38 {dimension_numbers = #tpu.dot_dimension_numbers<[1], [0], [0], [1], [0, 0, 1, 1], [], []>} : vector<16x8xf32>, vector<8x32xf32>, vector<16x32xf32> -> vector<16x32xf32>
    %123 = arith.addf %103, %122 : vector<16x32xf32>
    %124 = vector.extract_strided_slice %50 {offsets = [0, 24], sizes = [16, 8], strides = [1, 1]} : vector<16x32xf32> to vector<16x8xf32>
    %125 = vector.extract_strided_slice %56 {offsets = [0, 24], sizes = [32, 8], strides = [1, 1]} : vector<32x32xf32> to vector<32x8xf32>
    %126 = tpu.transpose %125, [1, 0] : vector<32x8xf32> -> vector<8x32xf32>
    %cst_39 = arith.constant dense<0.000000e+00> : vector<16x32xf32>
    %127 = tpu.matmul %124, %126, %cst_39 {dimension_numbers = #tpu.dot_dimension_numbers<[1], [0], [0], [1], [0, 0, 1, 1], [], []>} : vector<16x8xf32>, vector<8x32xf32>, vector<16x32xf32> -> vector<16x32xf32>
    %128 = arith.addf %127, %39 : vector<16x32xf32>
    %cst_40 = arith.constant dense<0xFF800000> : vector<16xf32>
    %129 = vector.multi_reduction <maximumf>, %128, %cst_40 [1] : vector<16x32xf32> to vector<16xf32>
    %130 = vector.shape_cast %129 : vector<16xf32> to vector<16x1xf32>
    %131 = vector.broadcast %130 : vector<16x1xf32> to vector<16x32xf32>
    %132 = arith.subf %128, %131 : vector<16x32xf32>
    %133 = math.exp %132 : vector<16x32xf32>
    %cst_41 = arith.constant dense<0.000000e+00> : vector<16xf32>
    %134 = vector.multi_reduction <add>, %133, %cst_41 [1] : vector<16x32xf32> to vector<16xf32>
    %135 = vector.shape_cast %134 : vector<16xf32> to vector<16x1xf32>
    %136 = tpu.reciprocal %135 {approx = true} : vector<16x1xf32> -> vector<16x1xf32>
    %137 = vector.broadcast %136 : vector<16x1xf32> to vector<16x32xf32>
    %138 = arith.mulf %133, %137 : vector<16x32xf32>
    %139 = vector.extract_strided_slice %60 {offsets = [0, 24], sizes = [32, 8], strides = [1, 1]} : vector<32x32xf32> to vector<32x8xf32>
    %cst_42 = arith.constant dense<0.000000e+00> : vector<16x8xf32>
    %140 = tpu.matmul %138, %139, %cst_42 {dimension_numbers = #tpu.dot_dimension_numbers<[1], [0], [0], [1], [0, 0, 1, 1], [], []>} : vector<16x32xf32>, vector<32x8xf32>, vector<16x8xf32> -> vector<16x8xf32>
    %141 = vector.extract_strided_slice %43 {offsets = [24, 0], sizes = [8, 32], strides = [1, 1]} : vector<32x96xf32> to vector<8x32xf32>
    %cst_43 = arith.constant dense<0.000000e+00> : vector<16x32xf32>
    %142 = tpu.matmul %140, %141, %cst_43 {dimension_numbers = #tpu.dot_dimension_numbers<[1], [0], [0], [1], [0, 0, 1, 1], [], []>} : vector<16x8xf32>, vector<8x32xf32>, vector<16x32xf32> -> vector<16x32xf32>
    %143 = arith.addf %123, %142 : vector<16x32xf32>
    %144 = vector.extract_strided_slice %43 {offsets = [0, 32], sizes = [32, 32], strides = [1, 1]} : vector<32x96xf32> to vector<32x32xf32>
    %cst_44 = arith.constant dense<0.000000e+00> : vector<16x32xf32>
    %145 = tpu.matmul %143, %144, %cst_44 {dimension_numbers = #tpu.dot_dimension_numbers<[1], [0], [0], [1], [0, 0, 1, 1], [], []>} : vector<16x32xf32>, vector<32x32xf32>, vector<16x32xf32> -> vector<16x32xf32>
    %146 = vector.extract_strided_slice %45 {offsets = [4, 0], sizes = [1, 32], strides = [1, 1]} : vector<6x32xf32> to vector<1x32xf32>
    %147 = vector.broadcast %146 : vector<1x32xf32> to vector<16x32xf32>
    %148 = arith.addf %145, %147 : vector<16x32xf32>
    %cst_45 = arith.constant 0.000000e+00 : f32
    %149 = vector.broadcast %cst_45 : f32 to vector<16x32xf32>
    %150 = arith.maximumf %148, %149 : vector<16x32xf32>
    %151 = vector.extract_strided_slice %43 {offsets = [0, 64], sizes = [32, 32], strides = [1, 1]} : vector<32x96xf32> to vector<32x32xf32>
    %cst_46 = arith.constant dense<0.000000e+00> : vector<16x32xf32>
    %152 = tpu.matmul %150, %151, %cst_46 {dimension_numbers = #tpu.dot_dimension_numbers<[1], [0], [0], [1], [0, 0, 1, 1], [], []>} : vector<16x32xf32>, vector<32x32xf32>, vector<16x32xf32> -> vector<16x32xf32>
    %153 = vector.extract_strided_slice %45 {offsets = [5, 0], sizes = [1, 32], strides = [1, 1]} : vector<6x32xf32> to vector<1x32xf32>
    %154 = vector.broadcast %153 : vector<1x32xf32> to vector<16x32xf32>
    %155 = arith.addf %152, %154 : vector<16x32xf32>
    %156 = arith.addf %155, %143 : vector<16x32xf32>
    %c1 = arith.constant 1 : index
    %c0_47 = arith.constant 0 : index
    %c0_48 = arith.constant 0 : index
    %157 = vector.load %arg2[%c1, %c0_47, %c0_48] : memref<2x32x96xf32, #tpu.memory_space<vmem>>, vector<1x32x96xf32>
    %158 = vector.shape_cast %157 : vector<1x32x96xf32> to vector<32x96xf32>
    %c1_49 = arith.constant 1 : index
    %c0_50 = arith.constant 0 : index
    %c0_51 = arith.constant 0 : index
    %159 = vector.load %arg3[%c1_49, %c0_50, %c0_51] : memref<2x32x96xf32, #tpu.memory_space<vmem>>, vector<1x32x96xf32>
    %160 = vector.shape_cast %159 : vector<1x32x96xf32> to vector<32x96xf32>
    %c1_52 = arith.constant 1 : index
    %c0_53 = arith.constant 0 : index
    %c0_54 = arith.constant 0 : index
    %161 = vector.load %arg4[%c1_52, %c0_53, %c0_54] : memref<2x6x32xf32, #tpu.memory_space<vmem>>, vector<1x6x32xf32>
    %162 = vector.shape_cast %161 : vector<1x6x32xf32> to vector<6x32xf32>
    %163 = vector.extract_strided_slice %158 {offsets = [0, 0], sizes = [32, 32], strides = [1, 1]} : vector<32x96xf32> to vector<32x32xf32>
    %cst_55 = arith.constant dense<0.000000e+00> : vector<16x32xf32>
    %164 = tpu.matmul %156, %163, %cst_55 {dimension_numbers = #tpu.dot_dimension_numbers<[1], [0], [0], [1], [0, 0, 1, 1], [], []>} : vector<16x32xf32>, vector<32x32xf32>, vector<16x32xf32> -> vector<16x32xf32>
    %165 = vector.extract_strided_slice %162 {offsets = [0, 0], sizes = [1, 32], strides = [1, 1]} : vector<6x32xf32> to vector<1x32xf32>
    %166 = vector.broadcast %165 : vector<1x32xf32> to vector<16x32xf32>
    %167 = arith.addf %164, %166 : vector<16x32xf32>
    %168 = vector.extract_strided_slice %158 {offsets = [0, 32], sizes = [32, 64], strides = [1, 1]} : vector<32x96xf32> to vector<32x64xf32>
    %cst_56 = arith.constant dense<0.000000e+00> : vector<32x64xf32>
    %169 = tpu.matmul %0, %168, %cst_56 {dimension_numbers = #tpu.dot_dimension_numbers<[1], [0], [0], [1], [0, 0, 1, 1], [], []>} : vector<32x32xf32>, vector<32x64xf32>, vector<32x64xf32> -> vector<32x64xf32>
    %170 = vector.extract_strided_slice %169 {offsets = [0, 0], sizes = [32, 32], strides = [1, 1]} : vector<32x64xf32> to vector<32x32xf32>
    %171 = vector.extract_strided_slice %162 {offsets = [1, 0], sizes = [1, 32], strides = [1, 1]} : vector<6x32xf32> to vector<1x32xf32>
    %172 = vector.broadcast %171 : vector<1x32xf32> to vector<32x32xf32>
    %173 = arith.addf %170, %172 : vector<32x32xf32>
    %174 = vector.extract_strided_slice %169 {offsets = [0, 32], sizes = [32, 32], strides = [1, 1]} : vector<32x64xf32> to vector<32x32xf32>
    %175 = vector.extract_strided_slice %162 {offsets = [2, 0], sizes = [1, 32], strides = [1, 1]} : vector<6x32xf32> to vector<1x32xf32>
    %176 = vector.broadcast %175 : vector<1x32xf32> to vector<32x32xf32>
    %177 = arith.addf %174, %176 : vector<32x32xf32>
    %178 = vector.extract_strided_slice %162 {offsets = [3, 0], sizes = [1, 32], strides = [1, 1]} : vector<6x32xf32> to vector<1x32xf32>
    %179 = vector.shape_cast %178 : vector<1x32xf32> to vector<1x32xf32>
    %180 = vector.broadcast %179 : vector<1x32xf32> to vector<16x32xf32>
    %181 = vector.extract_strided_slice %167 {offsets = [0, 0], sizes = [16, 8], strides = [1, 1]} : vector<16x32xf32> to vector<16x8xf32>
    %182 = vector.extract_strided_slice %173 {offsets = [0, 0], sizes = [32, 8], strides = [1, 1]} : vector<32x32xf32> to vector<32x8xf32>
    %183 = tpu.transpose %182, [1, 0] : vector<32x8xf32> -> vector<8x32xf32>
    %cst_57 = arith.constant dense<0.000000e+00> : vector<16x32xf32>
    %184 = tpu.matmul %181, %183, %cst_57 {dimension_numbers = #tpu.dot_dimension_numbers<[1], [0], [0], [1], [0, 0, 1, 1], [], []>} : vector<16x8xf32>, vector<8x32xf32>, vector<16x32xf32> -> vector<16x32xf32>
    %185 = arith.addf %184, %39 : vector<16x32xf32>
    %cst_58 = arith.constant dense<0xFF800000> : vector<16xf32>
    %186 = vector.multi_reduction <maximumf>, %185, %cst_58 [1] : vector<16x32xf32> to vector<16xf32>
    %187 = vector.shape_cast %186 : vector<16xf32> to vector<16x1xf32>
    %188 = vector.broadcast %187 : vector<16x1xf32> to vector<16x32xf32>
    %189 = arith.subf %185, %188 : vector<16x32xf32>
    %190 = math.exp %189 : vector<16x32xf32>
    %cst_59 = arith.constant dense<0.000000e+00> : vector<16xf32>
    %191 = vector.multi_reduction <add>, %190, %cst_59 [1] : vector<16x32xf32> to vector<16xf32>
    %192 = vector.shape_cast %191 : vector<16xf32> to vector<16x1xf32>
    %193 = tpu.reciprocal %192 {approx = true} : vector<16x1xf32> -> vector<16x1xf32>
    %194 = vector.broadcast %193 : vector<16x1xf32> to vector<16x32xf32>
    %195 = arith.mulf %190, %194 : vector<16x32xf32>
    %196 = vector.extract_strided_slice %177 {offsets = [0, 0], sizes = [32, 8], strides = [1, 1]} : vector<32x32xf32> to vector<32x8xf32>
    %cst_60 = arith.constant dense<0.000000e+00> : vector<16x8xf32>
    %197 = tpu.matmul %195, %196, %cst_60 {dimension_numbers = #tpu.dot_dimension_numbers<[1], [0], [0], [1], [0, 0, 1, 1], [], []>} : vector<16x32xf32>, vector<32x8xf32>, vector<16x8xf32> -> vector<16x8xf32>
    %198 = vector.extract_strided_slice %160 {offsets = [0, 0], sizes = [8, 32], strides = [1, 1]} : vector<32x96xf32> to vector<8x32xf32>
    %cst_61 = arith.constant dense<0.000000e+00> : vector<16x32xf32>
    %199 = tpu.matmul %197, %198, %cst_61 {dimension_numbers = #tpu.dot_dimension_numbers<[1], [0], [0], [1], [0, 0, 1, 1], [], []>} : vector<16x8xf32>, vector<8x32xf32>, vector<16x32xf32> -> vector<16x32xf32>
    %200 = arith.addf %180, %199 : vector<16x32xf32>
    %201 = vector.extract_strided_slice %167 {offsets = [0, 8], sizes = [16, 8], strides = [1, 1]} : vector<16x32xf32> to vector<16x8xf32>
    %202 = vector.extract_strided_slice %173 {offsets = [0, 8], sizes = [32, 8], strides = [1, 1]} : vector<32x32xf32> to vector<32x8xf32>
    %203 = tpu.transpose %202, [1, 0] : vector<32x8xf32> -> vector<8x32xf32>
    %cst_62 = arith.constant dense<0.000000e+00> : vector<16x32xf32>
    %204 = tpu.matmul %201, %203, %cst_62 {dimension_numbers = #tpu.dot_dimension_numbers<[1], [0], [0], [1], [0, 0, 1, 1], [], []>} : vector<16x8xf32>, vector<8x32xf32>, vector<16x32xf32> -> vector<16x32xf32>
    %205 = arith.addf %204, %39 : vector<16x32xf32>
    %cst_63 = arith.constant dense<0xFF800000> : vector<16xf32>
    %206 = vector.multi_reduction <maximumf>, %205, %cst_63 [1] : vector<16x32xf32> to vector<16xf32>
    %207 = vector.shape_cast %206 : vector<16xf32> to vector<16x1xf32>
    %208 = vector.broadcast %207 : vector<16x1xf32> to vector<16x32xf32>
    %209 = arith.subf %205, %208 : vector<16x32xf32>
    %210 = math.exp %209 : vector<16x32xf32>
    %cst_64 = arith.constant dense<0.000000e+00> : vector<16xf32>
    %211 = vector.multi_reduction <add>, %210, %cst_64 [1] : vector<16x32xf32> to vector<16xf32>
    %212 = vector.shape_cast %211 : vector<16xf32> to vector<16x1xf32>
    %213 = tpu.reciprocal %212 {approx = true} : vector<16x1xf32> -> vector<16x1xf32>
    %214 = vector.broadcast %213 : vector<16x1xf32> to vector<16x32xf32>
    %215 = arith.mulf %210, %214 : vector<16x32xf32>
    %216 = vector.extract_strided_slice %177 {offsets = [0, 8], sizes = [32, 8], strides = [1, 1]} : vector<32x32xf32> to vector<32x8xf32>
    %cst_65 = arith.constant dense<0.000000e+00> : vector<16x8xf32>
    %217 = tpu.matmul %215, %216, %cst_65 {dimension_numbers = #tpu.dot_dimension_numbers<[1], [0], [0], [1], [0, 0, 1, 1], [], []>} : vector<16x32xf32>, vector<32x8xf32>, vector<16x8xf32> -> vector<16x8xf32>
    %218 = vector.extract_strided_slice %160 {offsets = [8, 0], sizes = [8, 32], strides = [1, 1]} : vector<32x96xf32> to vector<8x32xf32>
    %cst_66 = arith.constant dense<0.000000e+00> : vector<16x32xf32>
    %219 = tpu.matmul %217, %218, %cst_66 {dimension_numbers = #tpu.dot_dimension_numbers<[1], [0], [0], [1], [0, 0, 1, 1], [], []>} : vector<16x8xf32>, vector<8x32xf32>, vector<16x32xf32> -> vector<16x32xf32>
    %220 = arith.addf %200, %219 : vector<16x32xf32>
    %221 = vector.extract_strided_slice %167 {offsets = [0, 16], sizes = [16, 8], strides = [1, 1]} : vector<16x32xf32> to vector<16x8xf32>
    %222 = vector.extract_strided_slice %173 {offsets = [0, 16], sizes = [32, 8], strides = [1, 1]} : vector<32x32xf32> to vector<32x8xf32>
    %223 = tpu.transpose %222, [1, 0] : vector<32x8xf32> -> vector<8x32xf32>
    %cst_67 = arith.constant dense<0.000000e+00> : vector<16x32xf32>
    %224 = tpu.matmul %221, %223, %cst_67 {dimension_numbers = #tpu.dot_dimension_numbers<[1], [0], [0], [1], [0, 0, 1, 1], [], []>} : vector<16x8xf32>, vector<8x32xf32>, vector<16x32xf32> -> vector<16x32xf32>
    %225 = arith.addf %224, %39 : vector<16x32xf32>
    %cst_68 = arith.constant dense<0xFF800000> : vector<16xf32>
    %226 = vector.multi_reduction <maximumf>, %225, %cst_68 [1] : vector<16x32xf32> to vector<16xf32>
    %227 = vector.shape_cast %226 : vector<16xf32> to vector<16x1xf32>
    %228 = vector.broadcast %227 : vector<16x1xf32> to vector<16x32xf32>
    %229 = arith.subf %225, %228 : vector<16x32xf32>
    %230 = math.exp %229 : vector<16x32xf32>
    %cst_69 = arith.constant dense<0.000000e+00> : vector<16xf32>
    %231 = vector.multi_reduction <add>, %230, %cst_69 [1] : vector<16x32xf32> to vector<16xf32>
    %232 = vector.shape_cast %231 : vector<16xf32> to vector<16x1xf32>
    %233 = tpu.reciprocal %232 {approx = true} : vector<16x1xf32> -> vector<16x1xf32>
    %234 = vector.broadcast %233 : vector<16x1xf32> to vector<16x32xf32>
    %235 = arith.mulf %230, %234 : vector<16x32xf32>
    %236 = vector.extract_strided_slice %177 {offsets = [0, 16], sizes = [32, 8], strides = [1, 1]} : vector<32x32xf32> to vector<32x8xf32>
    %cst_70 = arith.constant dense<0.000000e+00> : vector<16x8xf32>
    %237 = tpu.matmul %235, %236, %cst_70 {dimension_numbers = #tpu.dot_dimension_numbers<[1], [0], [0], [1], [0, 0, 1, 1], [], []>} : vector<16x32xf32>, vector<32x8xf32>, vector<16x8xf32> -> vector<16x8xf32>
    %238 = vector.extract_strided_slice %160 {offsets = [16, 0], sizes = [8, 32], strides = [1, 1]} : vector<32x96xf32> to vector<8x32xf32>
    %cst_71 = arith.constant dense<0.000000e+00> : vector<16x32xf32>
    %239 = tpu.matmul %237, %238, %cst_71 {dimension_numbers = #tpu.dot_dimension_numbers<[1], [0], [0], [1], [0, 0, 1, 1], [], []>} : vector<16x8xf32>, vector<8x32xf32>, vector<16x32xf32> -> vector<16x32xf32>
    %240 = arith.addf %220, %239 : vector<16x32xf32>
    %241 = vector.extract_strided_slice %167 {offsets = [0, 24], sizes = [16, 8], strides = [1, 1]} : vector<16x32xf32> to vector<16x8xf32>
    %242 = vector.extract_strided_slice %173 {offsets = [0, 24], sizes = [32, 8], strides = [1, 1]} : vector<32x32xf32> to vector<32x8xf32>
    %243 = tpu.transpose %242, [1, 0] : vector<32x8xf32> -> vector<8x32xf32>
    %cst_72 = arith.constant dense<0.000000e+00> : vector<16x32xf32>
    %244 = tpu.matmul %241, %243, %cst_72 {dimension_numbers = #tpu.dot_dimension_numbers<[1], [0], [0], [1], [0, 0, 1, 1], [], []>} : vector<16x8xf32>, vector<8x32xf32>, vector<16x32xf32> -> vector<16x32xf32>
    %245 = arith.addf %244, %39 : vector<16x32xf32>
    %cst_73 = arith.constant dense<0xFF800000> : vector<16xf32>
    %246 = vector.multi_reduction <maximumf>, %245, %cst_73 [1] : vector<16x32xf32> to vector<16xf32>
    %247 = vector.shape_cast %246 : vector<16xf32> to vector<16x1xf32>
    %248 = vector.broadcast %247 : vector<16x1xf32> to vector<16x32xf32>
    %249 = arith.subf %245, %248 : vector<16x32xf32>
    %250 = math.exp %249 : vector<16x32xf32>
    %cst_74 = arith.constant dense<0.000000e+00> : vector<16xf32>
    %251 = vector.multi_reduction <add>, %250, %cst_74 [1] : vector<16x32xf32> to vector<16xf32>
    %252 = vector.shape_cast %251 : vector<16xf32> to vector<16x1xf32>
    %253 = tpu.reciprocal %252 {approx = true} : vector<16x1xf32> -> vector<16x1xf32>
    %254 = vector.broadcast %253 : vector<16x1xf32> to vector<16x32xf32>
    %255 = arith.mulf %250, %254 : vector<16x32xf32>
    %256 = vector.extract_strided_slice %177 {offsets = [0, 24], sizes = [32, 8], strides = [1, 1]} : vector<32x32xf32> to vector<32x8xf32>
    %cst_75 = arith.constant dense<0.000000e+00> : vector<16x8xf32>
    %257 = tpu.matmul %255, %256, %cst_75 {dimension_numbers = #tpu.dot_dimension_numbers<[1], [0], [0], [1], [0, 0, 1, 1], [], []>} : vector<16x32xf32>, vector<32x8xf32>, vector<16x8xf32> -> vector<16x8xf32>
    %258 = vector.extract_strided_slice %160 {offsets = [24, 0], sizes = [8, 32], strides = [1, 1]} : vector<32x96xf32> to vector<8x32xf32>
    %cst_76 = arith.constant dense<0.000000e+00> : vector<16x32xf32>
    %259 = tpu.matmul %257, %258, %cst_76 {dimension_numbers = #tpu.dot_dimension_numbers<[1], [0], [0], [1], [0, 0, 1, 1], [], []>} : vector<16x8xf32>, vector<8x32xf32>, vector<16x32xf32> -> vector<16x32xf32>
    %260 = arith.addf %240, %259 : vector<16x32xf32>
    %261 = vector.extract_strided_slice %160 {offsets = [0, 32], sizes = [32, 32], strides = [1, 1]} : vector<32x96xf32> to vector<32x32xf32>
    %cst_77 = arith.constant dense<0.000000e+00> : vector<16x32xf32>
    %262 = tpu.matmul %260, %261, %cst_77 {dimension_numbers = #tpu.dot_dimension_numbers<[1], [0], [0], [1], [0, 0, 1, 1], [], []>} : vector<16x32xf32>, vector<32x32xf32>, vector<16x32xf32> -> vector<16x32xf32>
    %263 = vector.extract_strided_slice %162 {offsets = [4, 0], sizes = [1, 32], strides = [1, 1]} : vector<6x32xf32> to vector<1x32xf32>
    %264 = vector.broadcast %263 : vector<1x32xf32> to vector<16x32xf32>
    %265 = arith.addf %262, %264 : vector<16x32xf32>
    %cst_78 = arith.constant 0.000000e+00 : f32
    %266 = vector.broadcast %cst_78 : f32 to vector<16x32xf32>
    %267 = arith.maximumf %265, %266 : vector<16x32xf32>
    %268 = vector.extract_strided_slice %160 {offsets = [0, 64], sizes = [32, 32], strides = [1, 1]} : vector<32x96xf32> to vector<32x32xf32>
    %cst_79 = arith.constant dense<0.000000e+00> : vector<16x32xf32>
    %269 = tpu.matmul %267, %268, %cst_79 {dimension_numbers = #tpu.dot_dimension_numbers<[1], [0], [0], [1], [0, 0, 1, 1], [], []>} : vector<16x32xf32>, vector<32x32xf32>, vector<16x32xf32> -> vector<16x32xf32>
    %270 = vector.extract_strided_slice %162 {offsets = [5, 0], sizes = [1, 32], strides = [1, 1]} : vector<6x32xf32> to vector<1x32xf32>
    %271 = vector.broadcast %270 : vector<1x32xf32> to vector<16x32xf32>
    %272 = arith.addf %269, %271 : vector<16x32xf32>
    %273 = arith.addf %272, %260 : vector<16x32xf32>
    %c0_80 = arith.constant 0 : index
    %c0_81 = arith.constant 0 : index
    %274 = vector.load %arg5[%c0_80, %c0_81] : memref<16x32xf32, #tpu.memory_space<vmem>>, vector<16x32xf32>
    tpu.vector_store %arg5[%c0_80, %c0_81], %273 {strides = array<i32>} : memref<16x32xf32, #tpu.memory_space<vmem>>, vector<16x32xf32>,
    return
  }
}

</mosaic_0001>

<bundles_post_ra>
// kernel: zsl_prt_dec_forward.1
= control target key start
LH: loop header
LB: loop body
LE: loop exit
PB: predicated region body
PF: predicated region fallthrough
CT: control target
= control target key end

     0   :  { %10 = vsyncpa [#allocation3], 0  ;;  %s5089_s0 = inlined_call_operand.hbm [shape: f32[16,32], index: 0, kind: input, shape index: {}]   ;;  %s5090_s1 = inlined_call_operand.vmem [shape: f32[32,32], index: 1, kind: input, shape index: {}]   ;;  %s5091_s2 = inlined_call_operand.hbm [shape: f32[2,32,96], index: 2, kind: input, shape index: {}]   ;;  %s5092_s3 = inlined_call_operand.hbm [shape: f32[2,32,96], index: 3, kind: input, shape index: {}]   ;;  %s5093_s4 = inlined_call_operand.vmem [shape: f32[2,6,32], index: 4, kind: input, shape index: {}]   ;;  %s5094_s5 = inlined_call_operand.hbm [shape: f32[16,32], index: 5, kind: output, shape index: {}]  }
   0x1   :  { %11 = vsyncpa [#allocation6], 0 }
   0x2   :  { %12 = vsyncpa [#allocation4], 0  ;;  %s4561_s18 = smov [#allocation5]   ;;  %s4562_s20 = smov [#allocation2]  }
   0x3   :  { %s32_s19 = sshll.u32 %s4561_s18, 4  ;;  %s18_s21 = sshll.u32 %s4562_s20, 4  ;;  %s33_s19 = int_to_ptr.vmem [resolvable:$true] %s32_s19  ;;  %s4607_s21 = int_to_ptr.vmem [resolvable:$true] %s18_s21 }
   0x4   :  { %s4467_s24 = scalar_lea.hbm %s5091_s2, 1024 }
   0x5   :  { %p4468_p0 = scmp.ne.s32.totalorder %s5091_s2, %s4467_s24  ;;  %p4471_p1 = scmp.lt.u32.totalorder %s4467_s24, %s5091_s2 }
   0x7   :  { %p4473_p2 = pnand %p4471_p1, %p4468_p0 }
   0x9   :  { %4476 = shalt.err (!%p4473_p2)
}
   0xa   :  { %s4477_s29 = scalar_lea.vmem %s33_s19, 1024  ;;  %p4482_p4 = scmp.lt.s32.totalorder %s33_s19, %s33_s19 }
   0xb   :  { %p4478_p3 = scmp.ne.s32.totalorder %s33_s19, %s4477_s29  ;;  %p4483_p5 = scmp.lt.s32.totalorder %s4477_s29, %s4477_s29 }
   0xd   :  { %p4484_p6 = por %p4483_p5, %p4482_p4 }
   0xf   :  { %p4485_p7 = pnand %p4484_p6, %p4478_p3 }
  0x11   :  { %4488 = shalt.err (!%p4485_p7)
}
  0x12   :  { %s4563_s30 = smov 128   ;;  %s4564_s6 = smov 8  }
  0x13   :  { %38 = dma.hbm_to_vmem [thread:$0]  %s5091_s2, 1024, %s33_s19, [#allocation6], %s4563_s30, %s4563_s30, %s4564_s6  }
  0x14   :  { %s4489_s11 = scalar_lea.hbm %s5089_s0, 256 }
  0x15   :  { %p4490_p8 = scmp.ne.s32.totalorder %s5089_s0, %s4489_s11  ;;  %p4493_p9 = scmp.lt.u32.totalorder %s4489_s11, %s5089_s0 }
  0x17   :  { %p4495_p10 = pnand %p4493_p9, %p4490_p8 }
  0x19   :  { %4498 = shalt.err (!%p4495_p10)
}
  0x1a   :  { %s4499_s16 = scalar_lea.vmem %s4607_s21, 256  ;;  %p4504_p12 = scmp.lt.s32.totalorder %s4607_s21, %s4607_s21 }
  0x1b   :  { %p4500_p11 = scmp.ne.s32.totalorder %s4607_s21, %s4499_s16  ;;  %p4505_p13 = scmp.lt.s32.totalorder %s4499_s16, %s4499_s16 }
  0x1d   :  { %p4506_p0 = por %p4505_p13, %p4504_p12 }
  0x1f   :  { %p4507_p1 = pnand %p4506_p0, %p4500_p11 }
  0x21   :  { %4510 = shalt.err (!%p4507_p1)
}
  0x22   :  { %24 = dma.hbm_to_vmem [thread:$0]  %s5089_s0, 256, %s4607_s21, [#allocation3], %s4563_s30, %s4563_s30, %s4564_s6  }
  0x23   :  { %s4565_s18 = smov [#allocation7]   ;;  %s4511_s23 = scalar_lea.hbm %s5092_s3, 1024 }
  0x24   :  { %s44_s19 = sshll.u32 %s4565_s18, 4  ;;  %p4512_p2 = scmp.ne.s32.totalorder %s5092_s3, %s4511_s23  ;;  %s45_s19 = int_to_ptr.vmem [resolvable:$true] %s44_s19 }
  0x25   :  { %p4515_p3 = scmp.lt.u32.totalorder %s4511_s23, %s5092_s3 }
  0x27   :  { %p4517_p4 = pnand %p4515_p3, %p4512_p2 }
  0x29   :  { %4520 = shalt.err (!%p4517_p4)
}
  0x2a   :  { %s4521_s28 = scalar_lea.vmem %s45_s19, 1024  ;;  %p4526_p6 = scmp.lt.s32.totalorder %s45_s19, %s45_s19 }
  0x2b   :  { %p4522_p5 = scmp.ne.s32.totalorder %s45_s19, %s4521_s28  ;;  %p4527_p7 = scmp.lt.s32.totalorder %s4521_s28, %s4521_s28 }
  0x2d   :  { %p4528_p8 = por %p4527_p7, %p4526_p6 }
  0x2f   :  { %p4529_p9 = pnand %p4528_p8, %p4522_p5 }
  0x31   :  { %4532 = shalt.err (!%p4529_p9)
}
  0x32   :  { %50 = dma.hbm_to_vmem [thread:$0]  %s5092_s3, 1024, %s45_s19, [#allocation6], %s4563_s30, %s4563_s30, %s4564_s6  }
  0x33   :  { %4555 = dma.done.wait [#allocation3], 256  }
  0x34   :  { %4556 = vsyncadd [#allocation3], 4294967040 }
  0x35   :  { %4557 = dma.done.wait [#allocation6], 2048  }
  0x36   :  { %4558 = vsyncadd [#allocation6], 4294965248  ;;  %vm126_vm0 = vcmask 261120   ;;  %v113_v0 = vld [vmem:[#allocation5] sm:$0xff]  ;;  %v114_v1 = vld [vmem:[#allocation5 + $0x8] sm:$0xff]  ;;  %s4566_s8 = smov 96   ;;  %v68_v10 = vlaneseq }
  0x37   :  { %v115_v2 = vld [vmem:[#allocation5 + $0x10] sm:$0xff]  ;;  %v4203_v3 = vpack.i.bf16 %v114_v1, %v113_v0  ;;  %v116_v4 = vld [vmem:[#allocation5 + $0x18] sm:$0xff]  ;;  %v3947_v7 = vpack.c.bf16 %v114_v1, %v113_v0  ;;  %s4567_s10 = smov 32   ;;  %v4691_v25 = vld [vmem:[%s5090_s1 + $0x10] sm:$0xff]  ;;  %vm345_vm1 = vcmask 64512   ;;  %s4570_s2 = smov 88  }
  0x38   :  { %v4662_v5 = vld [vmem:[%s5090_s1] sm:$0xff]  ;;  %v4208_v6 = vpack.i.bf16 %v116_v4, %v115_v2  ;;  %v3951_v8 = vpack.c.bf16 %v116_v4, %v115_v2  ;;  %v4670_v11 = vshrl.u32 %v68_v10, 7  ;;  %v67_v15 = vld [vmem:[#allocation2 + $0x8] sm:$0xff]  ;;  %v4700_v26 = vld [vmem:[%s5090_s1 + $0x18] sm:$0xff]  ;;  %v96_v55 = vand.u32 127, %v68_v10  ;;  %s4571_s17 = smov 112  }
  0x39   :  { %3656 = vmatprep.mubr.msk.f32.mxu1 %vm126_vm0, %v4662_v5  ;;  %4204 = vrot.lane.b32.xlu0 %v4203_v3, %s4566_s8  ;;  %v66_v9 = vld [vmem:[#allocation2] sm:$0xff]  ;;  %v4686_v24 = vld [vmem:[%s5090_s1 + $0x8] sm:$0xff]  ;;  %vm4720_vm2 = vmpackc.low %vm345_vm1, %vm345_vm1  ;;  %v4568_v60 = vmov -1e+30   ;;  %s4569_s1 = smov 120   ;;  %s4572_s18 = smov 104  }
  0x3a   :  { %3645 = vmatprep.mubr.msk.f32.mxu0 %vm126_vm0, %v66_v9  ;;  %3948 = vmatprep.subr.bf16.mxu0 %v3947_v7  ;;  %v4675_v12 = vld [vmem:[%s5093_s4] sm:$0x3f]  ;;  %v331_v13 = vsub.s32 2, %v4670_v11  ;;  %v124_v27 = vsub.s32 0, %v4670_v11  ;;  %v323_v33 = vsub.s32 1, %v4670_v11  ;;  %v70_v56 = vadd.s32 8, %v4670_v11 }
  0x3b   :  { %3950 = vmatpush3.bf16.msra.mxu0 %v3947_v7  ;;  %v101_v57 = vand.u32 1, %v96_v55  ;;  %v75_v58 = vand.u32 1, %v4670_v11  ;;  %s4573_s19 = smov 80   ;;  %s4574_s20 = smov 72  }
  0x3c   :  { %3952 = vmatprep.subr.bf16.mxu0 %v3951_v8  ;;  %v332_v14 = vrot.slane %v4675_v12, %v331_v13  ;;  %v125_v29 = vrot.slane %v4675_v12, %v124_v27  ;;  %v324_v34 = vrot.slane %v4675_v12, %v323_v33  ;;  %v82_v59 = vand.u32 1, %v70_v56  ;;  %s4575_s22 = smov 64  }
  0x3d   :  { %4209 = vrot.lane.b32.xlu0 %v4208_v6, %s4566_s8  ;;  %vm109_vm3 = vcmp.eq.s32.totalorder %v75_v58, %v101_v57 }
  0x3e   :  { %vm110_vm4 = vcmp.eq.s32.totalorder %v82_v59, %v101_v57  ;;  %v4745_v61 = vsel %vm109_vm3, 0.0, %v4568_v60 }
  0x3f   :  { %3954 = vmatpush3.bf16.msra.mxu0 %v3951_v8  ;;  %v4747_v63 = vsel %vm110_vm4, 0.0, %v4568_v60 }
  0x41   :  { %334 = vrot.lane.b32.xlu0 %v332_v14, %s4567_s10 }
  0x42   :  { %3646 = vmatmul.mubr.msk.f32.vlgmr.msra.gmra.mrb[0].mxu0 %vm126_vm0, %v67_v15 }
  0xab   :  { %v4205_v16 = vpop.permute.xlu0 %4204 }
  0xac   :  { %v4207_v17 = vunpack.i.h.bf16 %v4205_v16  ;;  %v4206_v18 = vunpack.i.l.bf16 %v4205_v16 }
  0xae   :  { %v3955_v19 = vpack.c.bf16 %v4207_v17, %v4206_v18 }
  0xaf   :  { %v4210_v20 = vpop.permute.xlu0 %4209 }
  0xb0   :  { %v4212_v21 = vunpack.i.h.bf16 %v4210_v20  ;;  %v4211_v22 = vunpack.i.l.bf16 %v4210_v20  ;;  %3956 = vmatprep.subr.bf16.mxu1 %v3955_v19 }
  0xb1   :  { %3958 = vmatpush3.bf16.msra.mxu1 %v3955_v19 }
  0xb2   :  { %v3959_v23 = vpack.c.bf16 %v4212_v21, %v4211_v22 }
  0xb3   :  { %v335_v35 = vpop.permute.xlu0 %334 }
  0xb4   :  { %3960 = vmatprep.subr.bf16.mxu1 %v3959_v23 }
  0xb5   :  { %3962 = vmatpush3.bf16.msra.mxu1 %v3959_v23 }
  0xb8   :  { %3657 = vmatmul.mubr.msk.f32.vlgmr.msra.gmra.mrb[0].mxu1 %vm126_vm0, %v4686_v24 }
  0xb9   :  { %3659 = vmatprep.mubr.msk.f32.mxu1 %vm126_vm0, %v4691_v25 }
  0xbc   :  { %3660 = vmatmul.mubr.msk.f32.gmra.mrb[2].mxu1 %vm126_vm0, %v4700_v26 }
 0x115   :  { %v3647_v28 = vpop.f32.mrb[0].mxu0 }
 0x116   :  { %v199_v30 = vpop.f32.mrb[1].mxu0  ;;  %v4708_v31 = vadd.f32 %v3647_v28, %v125_v29 }
 0x117   :  { %v4710_v32 = vadd.f32 %v199_v30, %v125_v29 }
 0x119   :  { %3670 = vmatprep.mubr.msk.f32.mxu0 %vm345_vm1, %v4710_v32 }
 0x18b   :  { %v3658_v36 = vpop.f32.mrb[0].mxu1 }
 0x18c   :  { %v326_v37 = vadd.f32 %v3658_v36, %v324_v34  ;;  %v338_v38 = vadd.f32 %v3658_v36, %v335_v35  ;;  %v302_v39 = vpop.f32.mrb[1].mxu1  ;;  %v4767_v36 = vld [vmem:[#allocation7] sm:$0xff] }
 0x18d   :  { %v325_v40 = vadd.f32 %v324_v34, %v302_v39  ;;  %v337_v41 = vadd.f32 %v335_v35, %v302_v39 }
 0x18f   :  { %v3963_v43 = vpack.c.bf16 %v326_v37, %v325_v40  ;;  %v3661_v44 = vpop.f32.mrb[2].mxu1  ;;  %v4724_v45 = vpack.i.bf16 %v338_v38, %v337_v41  ;;  %v4726_v46 = vpack.i.bf16 %v326_v37, %v325_v40 }
 0x190   :  { %v328_v47 = vadd.f32 %v3661_v44, %v324_v34  ;;  %v340_v48 = vadd.f32 %v3661_v44, %v335_v35  ;;  %v312_v49 = vpop.f32.mrb[3].mxu1 }
 0x191   :  { %3965 = vmatprep.subr.msk.bf16.mxu0 %vm4720_vm2, %v3963_v43  ;;  %v327_v50 = vadd.f32 %v324_v34, %v312_v49  ;;  %v339_v51 = vadd.f32 %v335_v35, %v312_v49 }
 0x192   :  { %3968 = vmatpush3.bf16.xpose.msk.msra.mxu0 %vm4720_vm2, %v3963_v43 }
 0x193   :  { %v3969_v52 = vpack.c.bf16 %v328_v47, %v327_v50  ;;  %v4732_v53 = vpack.i.bf16 %v340_v48, %v339_v51  ;;  %v4734_v54 = vpack.i.bf16 %v328_v47, %v327_v50 }
 0x195   :  { %3971 = vmatprep.subr.msk.bf16.mxu0 %vm4720_vm2, %v3969_v52 }
 0x19a   :  { %3974 = vmatpush3.bf16.xpose.msk.msra.mxu0 %vm4720_vm2, %v3969_v52 }
 0x1a1   :  { %3671 = vmatmul.mubr.msk.f32.vlgmr.msra.gmra.mrb[2].mxu0 %vm345_vm1, %v4708_v31 }
 0x274   :  { %v3672_v62 = vpop.f32.mrb[2].mxu0 }
 0x275   :  { %v430_v0 = vpop.f32.mrb[3].mxu0  ;;  %v436_v2 = vadd.f32 %v3672_v62, %v4747_v63 }
 0x276   :  { %v431_v1 = vadd.f32 %v430_v0, %v4745_v61 }
 0x277   :  { %v442_v4 = vsel %vm126_vm0, %v436_v2, -inf }
 0x278   :  { %v439_v3 = vsel %vm126_vm0, %v431_v1, -inf }
 0x279   :  { %440 = vmax.xlane.f32.xlu1 %v439_v3 }
 0x27d   :  { %443 = vmax.xlane.f32.xlu1 %v442_v4 }
 0x28e   :  { %4214 = vrot.lane.b32.xlu1 %v4724_v45, %s4566_s8 }
 0x306   :  { %v441_v6 = vpop.xlane.xlu1 %440 }
 0x307   :  { %v445_v7 = vsub.f32 %v431_v1, %v441_v6 }
 0x309   :  { %v447_v8 = vmul.f32 1.442695, %v445_v7 }
 0x30a   :  { %v444_v9 = vpop.xlane.xlu1 %443 }
 0x30b   :  { %4403 = vpow2.f32 %v447_v8  ;;  %v446_v10 = vsub.f32 %v436_v2, %v444_v9 }
 0x30d   :  { %v449_v14 = vmul.f32 1.442695, %v446_v10 }
 0x30e   :  { %v4215_v15 = vpop.permute.xlu1 %4214 }
 0x30f   :  { %4405 = vpow2.f32 %v449_v14  ;;  %v4217_v16 = vunpack.i.h.bf16 %v4215_v15  ;;  %v4216_v17 = vunpack.i.l.bf16 %v4215_v15 }
 0x311   :  { %v3975_v18 = vpack.c.bf16 %v4217_v16, %v4216_v17 }
 0x313   :  { %3976 = vmatprep.subr.bf16.mxu1 %v3975_v18 }
 0x314   :  { %3978 = vmatpush3.bf16.msra.mxu1 %v3975_v18 }
 0x315   :  { %v4404_v19 = vpop.eup %4403 }
 0x316   :  { %v451_v20 = vsel %vm126_vm0, %v4404_v19, 0.0 }
 0x317   :  { %452 = vadd.xlane.f32.xlu1 %v451_v20 }
 0x319   :  { %v4406_v21 = vpop.eup %4405 }
 0x31a   :  { %v454_v22 = vsel %vm126_vm0, %v4406_v21, 0.0 }
 0x31b   :  { %455 = vadd.xlane.f32.xlu0 %v454_v22 }
 0x328   :  { %4219 = vrot.lane.b32.xlu1 %v4732_v53, %s4566_s8 }
 0x32c   :  { %4224 = vrot.lane.b32.xlu1 %v4726_v46, %s4569_s1 }
 0x330   :  { %4229 = vrot.lane.b32.xlu1 %v4734_v54, %s4569_s1 }
 0x331   :  { %643 = vrot.lane.b32.xlu0 %v4708_v31, %s4569_s1 }
 0x334   :  { %641 = vrot.lane.b32.xlu1 %v4710_v32, %s4569_s1 }
 0x3a4   :  { %v453_v23 = vpop.xlane.xlu1 %452 }
 0x3a5   :  { %4407 = vrcp.f32 %v453_v23 }
 0x3a8   :  { %v456_v28 = vpop.xlane.xlu0 %455  ;;  %v4220_v29 = vpop.permute.xlu1 %4219 }
 0x3a9   :  { %4409 = vrcp.f32 %v456_v28  ;;  %v4222_v30 = vunpack.i.h.bf16 %v4220_v29  ;;  %v4221_v34 = vunpack.i.l.bf16 %v4220_v29 }
 0x3ab   :  { %v3979_v35 = vpack.c.bf16 %v4222_v30, %v4221_v34 }
 0x3ac   :  { %v4225_v38 = vpop.permute.xlu1 %4224  ;;  %v644_v57 = vpop.permute.xlu0 %643 }
 0x3ad   :  { %3980 = vmatprep.subr.bf16.mxu1 %v3979_v35  ;;  %v4227_v40 = vunpack.i.h.bf16 %v4225_v38  ;;  %v4226_v41 = vunpack.i.l.bf16 %v4225_v38 }
 0x3ae   :  { %3982 = vmatpush3.bf16.msra.mxu1 %v3979_v35 }
 0x3af   :  { %v4408_v37 = vpop.eup %4407  ;;  %3684 = vmatprep.subr.mxu1 %v4767_v36  ;;  %v3983_v47 = vpack.c.bf16 %v4227_v40, %v4226_v41 }
 0x3b0   :  { %v459_v39 = vmul.f32 %v4408_v37, %v4404_v19  ;;  %v4230_v48 = vpop.permute.xlu1 %4229 }
 0x3b1   :  { %v4232_v49 = vunpack.i.h.bf16 %v4230_v48  ;;  %v4231_v50 = vunpack.i.l.bf16 %v4230_v48 }
 0x3b2   :  { %3681 = vmatprep.mubr.msk.f32.mxu1 %vm126_vm0, %v459_v39 }
 0x3b3   :  { %v4410_v43 = vpop.eup %4409  ;;  %v3989_v55 = vpack.c.bf16 %v4232_v49, %v4231_v50 }
 0x3b4   :  { %v460_v44 = vmul.f32 %v4410_v43, %v4406_v21  ;;  %v642_v56 = vpop.permute.xlu1 %641 }
 0x3b6   :  { %3682 = vmatmul.mubr.msk.f32.vlgmr.msra.gmra.mrb[4].mxu1 %vm126_vm0, %v460_v44 }
 0x3b7   :  { %3685 = vmatpush3.msra.mxu1 %v4767_v36 }
 0x3b8   :  { %3985 = vmatprep.subr.msk.bf16.mxu1 %vm4720_vm2, %v3983_v47 }
 0x489   :  { %v3683_v51 = vpop.f32.mrb[4].mxu1 }
 0x48a   :  { %v549_v52 = vpop.f32.mrb[5].mxu1 }
 0x48b   :  { %3686 = vmatprep.mubr.msk.f32.mxu1 %vm345_vm1, %v549_v52 }
 0x48c   :  { %3687 = vmatmul.mubr.msk.f32.vlgmr.msra.gmra.mrb[6].mxu1 %vm345_vm1, %v3683_v51 }
 0x48d   :  { %3988 = vmatpush3.bf16.xpose.msk.msra.mxu1 %vm4720_vm2, %v3983_v47  ;;  %3697 = vmatprep.mubr.msk.f32.mxu1 %vm345_vm1, %v642_v56 }
 0x48e   :  { %3991 = vmatprep.subr.msk.bf16.mxu1 %vm4720_vm2, %v3989_v55 }
 0x495   :  { %3994 = vmatpush3.bf16.xpose.msk.msra.mxu1 %vm4720_vm2, %v3989_v55 }
 0x49c   :  { %3698 = vmatmul.mubr.msk.f32.vlgmr.msra.gmra.mrb[8].mxu1 %vm345_vm1, %v644_v57 }
 0x56f   :  { %v3699_v58 = vpop.f32.mrb[8].mxu1 }
 0x570   :  { %v737_v59 = vadd.f32 %v3699_v58, %v4747_v63  ;;  %v731_v60 = vpop.f32.mrb[9].mxu1 }
 0x571   :  { %v732_v62 = vadd.f32 %v731_v60, %v4745_v61 }
 0x572   :  { %v743_v0 = vsel %vm126_vm0, %v737_v59, -inf }
 0x573   :  { %744 = vmax.xlane.f32.xlu0 %v743_v0  ;;  %v740_v1 = vsel %vm126_vm0, %v732_v62, -inf }
 0x574   :  { %741 = vmax.xlane.f32.xlu1 %v740_v1 }
 0x585   :  { %4234 = vrot.lane.b32.xlu1 %v4724_v45, %s4570_s2 }
 0x589   :  { %4239 = vrot.lane.b32.xlu0 %v4732_v53, %s4570_s2  ;;  %4244 = vrot.lane.b32.xlu1 %v4726_v46, %s4571_s17 }
 0x58d   :  { %940 = vrot.lane.b32.xlu0 %v4708_v31, %s4571_s17 }
 0x591   :  { %4259 = vrot.lane.b32.xlu0 %v4734_v54, %s4572_s18 }
 0x595   :  { %1237 = vrot.lane.b32.xlu0 %v4708_v31, %s4572_s18 }
 0x600   :  { %v745_v2 = vpop.xlane.xlu0 %744 }
 0x601   :  { %v747_v3 = vsub.f32 %v737_v59, %v745_v2  ;;  %v742_v4 = vpop.xlane.xlu1 %741  ;;  %v4833_v59 = vld [vmem:[#allocation7 + $0x8] sm:$0xff] }
 0x602   :  { %v746_v6 = vsub.f32 %v732_v62, %v742_v4  ;;  %3711 = vmatprep.subr.mxu1 %v4833_v59 }
 0x603   :  { %v750_v7 = vmul.f32 1.442695, %v747_v3  ;;  %3712 = vmatpush3.msra.mxu1 %v4833_v59 }
 0x604   :  { %v748_v8 = vmul.f32 1.442695, %v746_v6  ;;  %v4240_v9 = vpop.permute.xlu0 %4239 }
 0x605   :  { %4411 = vpow2.f32 %v750_v7  ;;  %v4235_v10 = vpop.permute.xlu1 %4234  ;;  %v4242_v14 = vunpack.i.h.bf16 %v4240_v9  ;;  %v4241_v15 = vunpack.i.l.bf16 %v4240_v9 }
 0x606   :  { %v4237_v16 = vunpack.i.h.bf16 %v4235_v10  ;;  %v4236_v17 = vunpack.i.l.bf16 %v4235_v10  ;;  %4413 = vpow2.f32 %v748_v8 }
 0x607   :  { %v3999_v20 = vpack.c.bf16 %v4242_v14, %v4241_v15 }
 0x608   :  { %v3995_v18 = vpack.c.bf16 %v4237_v16, %v4236_v17 }
 0x609   :  { %v4245_v19 = vpop.permute.xlu1 %4244 }
 0x60a   :  { %v4247_v21 = vunpack.i.h.bf16 %v4245_v19  ;;  %v4246_v22 = vunpack.i.l.bf16 %v4245_v19  ;;  %3996 = vmatprep.subr.bf16.mxu0 %v3995_v18 }
 0x60b   :  { %3998 = vmatpush3.bf16.msra.mxu0 %v3995_v18 }
 0x60c   :  { %4000 = vmatprep.subr.bf16.mxu0 %v3999_v20  ;;  %v4003_v31 = vpack.c.bf16 %v4247_v21, %v4246_v22 }
 0x60f   :  { %v4412_v23 = vpop.eup %4411  ;;  %4002 = vmatpush3.bf16.msra.mxu0 %v3999_v20 }
 0x610   :  { %4005 = vmatprep.subr.msk.bf16.mxu0 %vm4720_vm2, %v4003_v31  ;;  %v755_v28 = vsel %vm126_vm0, %v4412_v23, 0.0  ;;  %v4414_v29 = vpop.eup %4413 }
 0x611   :  { %756 = vadd.xlane.f32.xlu1 %v755_v28  ;;  %v752_v30 = vsel %vm126_vm0, %v4414_v29, 0.0 }
 0x615   :  { %753 = vadd.xlane.f32.xlu1 %v752_v30 }
 0x626   :  { %4249 = vrot.lane.b32.xlu1 %v4734_v54, %s4571_s17 }
 0x62a   :  { %938 = vrot.lane.b32.xlu1 %v4710_v32, %s4571_s17 }
 0x62e   :  { %4254 = vrot.lane.b32.xlu1 %v4726_v46, %s4572_s18 }
 0x632   :  { %1235 = vrot.lane.b32.xlu1 %v4710_v32, %s4572_s18  ;;  %v941_v32 = vpop.permute.xlu0 %940 }
 0x636   :  { %v4260_v51 = vpop.permute.xlu0 %4259 }
 0x637   :  { %v4262_v52 = vunpack.i.h.bf16 %v4260_v51  ;;  %v4261_v55 = vunpack.i.l.bf16 %v4260_v51 }
 0x639   :  { %v4029_v56 = vpack.c.bf16 %v4262_v52, %v4261_v55 }
 0x63a   :  { %v1238_v58 = vpop.permute.xlu0 %1237 }
 0x69e   :  { %v757_v34 = vpop.xlane.xlu1 %756 }
 0x69f   :  { %4415 = vrcp.f32 %v757_v34 }
 0x6a2   :  { %v754_v35 = vpop.xlane.xlu1 %753 }
 0x6a3   :  { %4417 = vrcp.f32 %v754_v35 }
 0x6a6   :  { %v4250_v37 = vpop.permute.xlu1 %4249 }
 0x6a7   :  { %v4252_v41 = vunpack.i.h.bf16 %v4250_v37  ;;  %v4251_v43 = vunpack.i.l.bf16 %v4250_v37 }
 0x6a9   :  { %v4416_v38 = vpop.eup %4415  ;;  %v4009_v47 = vpack.c.bf16 %v4252_v41, %v4251_v43 }
 0x6aa   :  { %v939_v39 = vpop.permute.xlu1 %938  ;;  %v761_v44 = vmul.f32 %v4416_v38, %v4412_v23 }
 0x6ad   :  { %v4418_v40 = vpop.eup %4417 }
 0x6ae   :  { %v760_v54 = vmul.f32 %v4418_v40, %v4414_v29  ;;  %v4255_v46 = vpop.permute.xlu1 %4254 }
 0x6af   :  { %v4257_v48 = vunpack.i.h.bf16 %v4255_v46  ;;  %v4256_v49 = vunpack.i.l.bf16 %v4255_v46 }
 0x6b0   :  { %3708 = vmatprep.mubr.msk.f32.mxu0 %vm126_vm0, %v760_v54 }
 0x6b1   :  { %3709 = vmatmul.mubr.msk.f32.vlgmr.msra.gmra.mrb[4].mxu0 %vm126_vm0, %v761_v44  ;;  %v4023_v50 = vpack.c.bf16 %v4257_v48, %v4256_v49 }
 0x6b2   :  { %4008 = vmatpush3.bf16.xpose.msk.msra.mxu0 %vm4720_vm2, %v4003_v31  ;;  %3724 = vmatprep.mubr.msk.f32.mxu0 %vm345_vm1, %v939_v39  ;;  %v1236_v57 = vpop.permute.xlu1 %1235 }
 0x6b3   :  { %4011 = vmatprep.subr.msk.bf16.mxu0 %vm4720_vm2, %v4009_v47 }
 0x6ba   :  { %4014 = vmatpush3.bf16.xpose.msk.msra.mxu0 %vm4720_vm2, %v4009_v47 }
 0x6bb   :  { %4025 = vmatprep.subr.msk.bf16.mxu0 %vm4720_vm2, %v4023_v50 }
 0x6c1   :  { %3725 = vmatmul.mubr.msk.f32.vlgmr.msra.gmra.mrb[6].mxu0 %vm345_vm1, %v941_v32 }
 0x6c2   :  { %4028 = vmatpush3.bf16.xpose.msk.msra.mxu0 %vm4720_vm2, %v4023_v50  ;;  %3751 = vmatprep.mubr.msk.f32.mxu0 %vm345_vm1, %v1236_v57 }
 0x6c3   :  { %4031 = vmatprep.subr.msk.bf16.mxu0 %vm4720_vm2, %v4029_v56 }
 0x6ca   :  { %4034 = vmatpush3.bf16.xpose.msk.msra.mxu0 %vm4720_vm2, %v4029_v56 }
 0x6d1   :  { %3752 = vmatmul.mubr.msk.f32.vlgmr.msra.gmra.mrb[8].mxu0 %vm345_vm1, %v1238_v58 }
 0x784   :  { %v3710_v60 = vpop.f32.mrb[4].mxu0 }
 0x785   :  { %v846_v62 = vpop.f32.mrb[5].mxu0 }
 0x786   :  { %3713 = vmatprep.mubr.msk.f32.mxu1 %vm345_vm1, %v846_v62 }
 0x787   :  { %3714 = vmatmul.mubr.msk.f32.vlgmr.msra.gmra.mrb[6].mxu1 %vm345_vm1, %v3710_v60  ;;  %v119_v60 = vld [vmem:[#allocation7 + $0x10] sm:$0xff] }
 0x794   :  { %v3726_v0 = vpop.f32.mrb[6].mxu0 }
 0x795   :  { %v1034_v1 = vadd.f32 %v3726_v0, %v4747_v63  ;;  %v1028_v2 = vpop.f32.mrb[7].mxu0 }
 0x796   :  { %v1029_v3 = vadd.f32 %v1028_v2, %v4745_v61 }
 0x797   :  { %v1040_v4 = vsel %vm126_vm0, %v1034_v1, -inf }
 0x798   :  { %1041 = vmax.xlane.f32.xlu0 %v1040_v4  ;;  %v1037_v6 = vsel %vm126_vm0, %v1029_v3, -inf }
 0x799   :  { %1038 = vmax.xlane.f32.xlu1 %v1037_v6 }
 0x7a4   :  { %v3753_v7 = vpop.f32.mrb[8].mxu0 }
 0x7a5   :  { %v1325_v8 = vpop.f32.mrb[9].mxu0  ;;  %v1331_v31 = vadd.f32 %v3753_v7, %v4747_v63 }
 0x7a6   :  { %v1326_v22 = vadd.f32 %v1325_v8, %v4745_v61 }
 0x7a7   :  { %v1337_v28 = vsel %vm126_vm0, %v1331_v31, -inf }
 0x7a8   :  { %v1334_v23 = vsel %vm126_vm0, %v1326_v22, -inf }
 0x825   :  { %v1042_v9 = vpop.xlane.xlu0 %1041 }
 0x826   :  { %v1044_v10 = vsub.f32 %v1034_v1, %v1042_v9  ;;  %v1039_v14 = vpop.xlane.xlu1 %1038 }
 0x827   :  { %v1043_v15 = vsub.f32 %v1029_v3, %v1039_v14 }
 0x828   :  { %v1047_v16 = vmul.f32 1.442695, %v1044_v10 }
 0x829   :  { %v1045_v17 = vmul.f32 1.442695, %v1043_v15 }
 0x82a   :  { %4419 = vpow2.f32 %v1047_v16  ;;  %v120_v16 = vld [vmem:[#allocation7 + $0x18] sm:$0xff] }
 0x82b   :  { %4421 = vpow2.f32 %v1045_v17 }
 0x834   :  { %v4420_v18 = vpop.eup %4419 }
 0x835   :  { %v4422_v19 = vpop.eup %4421  ;;  %v1052_v20 = vsel %vm126_vm0, %v4420_v18, 0.0 }
 0x836   :  { %1053 = vadd.xlane.f32.xlu1 %v1052_v20  ;;  %v1049_v21 = vsel %vm126_vm0, %v4422_v19, 0.0 }
 0x837   :  { %1050 = vadd.xlane.f32.xlu0 %v1049_v21 }
 0x847   :  { %4269 = vrot.lane.b32.xlu1 %v4732_v53, %s4573_s19 }
 0x84d   :  { %4264 = vrot.lane.b32.xlu0 %v4724_v45, %s4573_s19 }
 0x86b   :  { %1335 = vmax.xlane.f32.xlu1 %v1334_v23 }
 0x86c   :  { %1338 = vmax.xlane.f32.xlu0 %v1337_v28 }
 0x8c3   :  { %v1054_v29 = vpop.xlane.xlu1 %1053 }
 0x8c4   :  { %v1051_v30 = vpop.xlane.xlu0 %1050 }
 0x8c5   :  { %4423 = vrcp.f32 %v1051_v30 }
 0x8c6   :  { %4425 = vrcp.f32 %v1054_v29 }
 0x8c7   :  { %v4270_v34 = vpop.permute.xlu1 %4269 }
 0x8c8   :  { %v4265_v35 = vpop.permute.xlu0 %4264  ;;  %v4272_v37 = vunpack.i.h.bf16 %v4270_v34  ;;  %v4271_v38 = vunpack.i.l.bf16 %v4270_v34 }
 0x8c9   :  { %v4267_v39 = vunpack.i.h.bf16 %v4265_v35  ;;  %v4266_v40 = vunpack.i.l.bf16 %v4265_v35 }
 0x8ca   :  { %v4019_v43 = vpack.c.bf16 %v4272_v37, %v4271_v38 }
 0x8cb   :  { %v4015_v41 = vpack.c.bf16 %v4267_v39, %v4266_v40 }
 0x8cd   :  { %4016 = vmatprep.subr.bf16.mxu1 %v4015_v41 }
 0x8ce   :  { %4018 = vmatpush3.bf16.msra.mxu1 %v4015_v41 }
 0x8cf   :  { %v4424_v54 = vpop.eup %4423  ;;  %4020 = vmatprep.subr.bf16.mxu1 %v4019_v43 }
 0x8d0   :  { %v4426_v44 = vpop.eup %4425  ;;  %v1057_v47 = vmul.f32 %v4424_v54, %v4422_v19  ;;  %v4288_v19 = vpack.i.bf16 %v120_v16, %v119_v60 }
 0x8d1   :  { %v1058_v46 = vmul.f32 %v4426_v44, %v4420_v18  ;;  %v4283_v18 = vpack.i.bf16 %v4833_v59, %v4767_v36  ;;  %v343_v36 = vsub.s32 3, %v4670_v11 }
 0x8d2   :  { %4022 = vmatpush3.bf16.msra.mxu1 %v4019_v43  ;;  %3735 = vmatprep.mubr.msk.f32.mxu1 %vm126_vm0, %v1057_v47 }
 0x8d3   :  { %3738 = vmatprep.subr.mxu1 %v119_v60  ;;  %v344_v44 = vrot.slane %v4675_v12, %v343_v36 }
 0x8d5   :  { %3736 = vmatmul.mubr.msk.f32.vlgmr.msra.gmra.mrb[10].mxu1 %vm126_vm0, %v1058_v46 }
 0x8d6   :  { %3739 = vmatpush3.msra.mxu1 %v119_v60 }
 0x8f8   :  { %v1336_v32 = vpop.xlane.xlu1 %1335 }
 0x8f9   :  { %v1340_v48 = vsub.f32 %v1326_v22, %v1336_v32  ;;  %v1339_v49 = vpop.xlane.xlu0 %1338 }
 0x8fa   :  { %v1341_v50 = vsub.f32 %v1331_v31, %v1339_v49  ;;  %v1735_v49 = vld [vmem:[#allocation5 + $0x20] sm:$0xff] }
 0x8fb   :  { %v1342_v51 = vmul.f32 1.442695, %v1340_v48 }
 0x8fc   :  { %v1344_v52 = vmul.f32 1.442695, %v1341_v50  ;;  %v1736_v50 = vld [vmem:[#allocation5 + $0x28] sm:$0xff] }
 0x8fd   :  { %4427 = vpow2.f32 %v1342_v51  ;;  %v1737_v51 = vld [vmem:[#allocation5 + $0x30] sm:$0xff] }
 0x8fe   :  { %4429 = vpow2.f32 %v1344_v52  ;;  %v4303_v52 = vpack.i.bf16 %v1736_v50, %v1735_v49 }
 0x907   :  { %v4428_v55 = vpop.eup %4427 }
 0x908   :  { %v4430_v56 = vpop.eup %4429  ;;  %v1346_v57 = vsel %vm126_vm0, %v4428_v55, 0.0 }
 0x909   :  { %1347 = vadd.xlane.f32.xlu0 %v1346_v57  ;;  %v1349_v58 = vsel %vm126_vm0, %v4430_v56, 0.0  ;;  %v4059_v57 = vpack.c.bf16 %v1736_v50, %v1735_v49 }
 0x90a   :  { %1350 = vadd.xlane.f32.xlu1 %v1349_v58  ;;  %v1534_v58 = vsub.s32 4, %v4670_v11 }
 0x91b   :  { %4279 = vrot.lane.b32.xlu1 %v4732_v53, %s4574_s20 }
 0x91f   :  { %4274 = vrot.lane.b32.xlu0 %v4724_v45, %s4574_s20  ;;  %4284 = vrot.lane.b32.xlu1 %v4283_v18, %s4566_s8 }
 0x923   :  { %4289 = vrot.lane.b32.xlu0 %v4288_v19, %s4566_s8  ;;  %4294 = vrot.lane.b32.xlu1 %v4283_v18, %s4575_s22 }
 0x927   :  { %4299 = vrot.lane.b32.xlu0 %v4288_v19, %s4575_s22  ;;  %4304 = vrot.lane.b32.xlu1 %v4303_v52, %s4566_s8 }
 0x996   :  { %v1348_v62 = vpop.xlane.xlu0 %1347 }
 0x997   :  { %4431 = vrcp.f32 %v1348_v62  ;;  %v1351_v4 = vpop.xlane.xlu1 %1350  ;;  %v1535_v62 = vrot.slane %v4675_v12, %v1534_v58 }
 0x998   :  { %4433 = vrcp.f32 %v1351_v4 }
 0x99a   :  { %v4275_v0 = vpop.permute.xlu0 %4274 }
 0x99b   :  { %v4277_v1 = vunpack.i.h.bf16 %v4275_v0  ;;  %v4276_v2 = vunpack.i.l.bf16 %v4275_v0  ;;  %v4280_v6 = vpop.permute.xlu1 %4279 }
 0x99c   :  { %v4282_v8 = vunpack.i.h.bf16 %v4280_v6  ;;  %v4281_v9 = vunpack.i.l.bf16 %v4280_v6 }
 0x99d   :  { %v4035_v3 = vpack.c.bf16 %v4277_v1, %v4276_v2 }
 0x99e   :  { %v4039_v15 = vpack.c.bf16 %v4282_v8, %v4281_v9  ;;  %v4290_v21 = vpop.permute.xlu0 %4289 }
 0x99f   :  { %4036 = vmatprep.subr.bf16.mxu1 %v4035_v3  ;;  %v4285_v20 = vpop.permute.xlu1 %4284  ;;  %v4292_v23 = vunpack.i.h.bf16 %v4290_v21  ;;  %v4291_v28 = vunpack.i.l.bf16 %v4290_v21 }
 0x9a0   :  { %v4287_v22 = vunpack.i.h.bf16 %v4285_v20  ;;  %v4286_v31 = vunpack.i.l.bf16 %v4285_v20 }
 0x9a1   :  { %v4432_v7 = vpop.eup %4431  ;;  %v4047_v30 = vpack.c.bf16 %v4292_v23, %v4291_v28 }
 0x9a2   :  { %v1354_v14 = vmul.f32 %v4432_v7, %v4428_v55  ;;  %v4434_v45 = vpop.eup %4433  ;;  %v4043_v29 = vpack.c.bf16 %v4287_v22, %v4286_v31  ;;  %v4300_v37 = vpop.permute.xlu0 %4299  ;;  %v1738_v55 = vld [vmem:[#allocation5 + $0x38] sm:$0xff] }
 0x9a3   :  { %v1355_v17 = vmul.f32 %v4434_v45, %v4430_v56  ;;  %v4295_v59 = vpop.permute.xlu1 %4294  ;;  %v4302_v40 = vunpack.i.h.bf16 %v4300_v37  ;;  %v4301_v41 = vunpack.i.l.bf16 %v4300_v37  ;;  %v4308_v56 = vpack.i.bf16 %v1738_v55, %v1737_v51 }
 0x9a4   :  { %4044 = vmatprep.subr.bf16.mxu0 %v4043_v29  ;;  %v4297_v38 = vunpack.i.h.bf16 %v4295_v59  ;;  %v4296_v39 = vunpack.i.l.bf16 %v4295_v59  ;;  %v4063_v45 = vpack.c.bf16 %v1738_v55, %v1737_v51 }
 0x9a5   :  { %4046 = vmatpush3.bf16.msra.mxu0 %v4043_v29  ;;  %v4055_v54 = vpack.c.bf16 %v4302_v40, %v4301_v41  ;;  %4309 = vrot.lane.b32.xlu0 %v4308_v56, %s4566_s8 }
 0x9a6   :  { %4048 = vmatprep.subr.bf16.mxu0 %v4047_v30  ;;  %v4051_v43 = vpack.c.bf16 %v4297_v38, %v4296_v39 }
 0x9a7   :  { %v4305_v60 = vpop.permute.xlu1 %4304 }
 0x9a8   :  { %v3737_v53 = vpop.f32.mrb[10].mxu1  ;;  %v4307_v0 = vunpack.i.h.bf16 %v4305_v60  ;;  %v4306_v1 = vunpack.i.l.bf16 %v4305_v60 }
 0x9a9   :  { %v1143_v10 = vpop.f32.mrb[11].mxu1  ;;  %4050 = vmatpush3.bf16.msra.mxu0 %v4047_v30 }
 0x9aa   :  { %3740 = vmatprep.mubr.msk.f32.mxu1 %vm345_vm1, %v1143_v10  ;;  %4060 = vmatprep.subr.bf16.mxu0 %v4059_v57 }
 0x9ab   :  { %3741 = vmatmul.mubr.msk.f32.vlgmr.msra.gmra.mrb[6].mxu1 %vm345_vm1, %v3737_v53 }
 0x9ac   :  { %4038 = vmatpush3.bf16.msra.mxu1 %v4035_v3  ;;  %3762 = vmatprep.mubr.msk.f32.mxu1 %vm126_vm0, %v1354_v14  ;;  %v4067_v3 = vpack.c.bf16 %v4307_v0, %v4306_v1 }
 0x9ad   :  { %4040 = vmatprep.subr.bf16.mxu1 %v4039_v15 }
 0x9b0   :  { %4042 = vmatpush3.bf16.msra.mxu1 %v4039_v15 }
 0x9b1   :  { %3765 = vmatprep.subr.mxu1 %v120_v16 }
 0x9b3   :  { %3763 = vmatmul.mubr.msk.f32.vlgmr.msra.gmra.mrb[12].mxu1 %vm126_vm0, %v1355_v17 }
 0x9b4   :  { %3766 = vmatpush3.msra.mxu1 %v120_v16  ;;  %v1637_v16 = vsub.s32 5, %v4670_v11 }
 0x9b5   :  { %4052 = vmatprep.subr.bf16.mxu1 %v4051_v43 }
 0xa17   :  { %v4310_v2 = vpop.permute.xlu0 %4309 }
 0xa18   :  { %v4312_v8 = vunpack.i.h.bf16 %v4310_v2  ;;  %v4311_v9 = vunpack.i.l.bf16 %v4310_v2 }
 0xa1a   :  { %v4071_v15 = vpack.c.bf16 %v4312_v8, %v4311_v9 }
 0xa86   :  { %v3764_v34 = vpop.f32.mrb[12].mxu1 }
 0xa87   :  { %v1440_v35 = vpop.f32.mrb[13].mxu1 }
 0xa88   :  { %3767 = vmatprep.mubr.msk.f32.mxu1 %vm345_vm1, %v1440_v35 }
 0xa89   :  { %3768 = vmatmul.mubr.msk.f32.vlgmr.msra.gmra.mrb[6].mxu1 %vm345_vm1, %v3764_v34 }
 0xa8a   :  { %4054 = vmatpush3.bf16.msra.mxu1 %v4051_v43 }
 0xa8b   :  { %4056 = vmatprep.subr.bf16.mxu1 %v4055_v54 }
 0xa8e   :  { %4058 = vmatpush3.bf16.msra.mxu1 %v4055_v54 }
 0xa8f   :  { %4068 = vmatprep.subr.bf16.mxu1 %v4067_v3 }
 0xb5c   :  { %v3769_v47 = vpop.f32.mrb[6].mxu1 }
 0xb5d   :  { %v1521_v46 = vpop.f32.mrb[7].mxu1  ;;  %v4171_v48 = vadd.f32 %v3769_v47, %v344_v44 }
 0xb5e   :  { %v4172_v32 = vadd.f32 %v1521_v46, %v344_v44 }
 0xb60   :  { %3778 = vmatprep.mubr.msk.f32.mxu0 %vm126_vm0, %v4172_v32 }
 0xb61   :  { %3779 = vmatmul.mubr.msk.f32.vlgmr.msra.gmra.mrb[10].mxu0 %vm126_vm0, %v4171_v48 }
 0xb62   :  { %4062 = vmatpush3.bf16.msra.mxu0 %v4059_v57 }
 0xb63   :  { %4064 = vmatprep.subr.bf16.mxu0 %v4063_v45 }
 0xb66   :  { %4066 = vmatpush3.bf16.msra.mxu0 %v4063_v45 }
 0xc34   :  { %v3780_v4 = vpop.f32.mrb[10].mxu0 }
 0xc35   :  { %v1630_v6 = vadd.f32 %v3780_v4, %v1535_v62  ;;  %v1624_v7 = vpop.f32.mrb[11].mxu0 }
 0xc36   :  { %v1625_v53 = vadd.f32 %v1624_v7, %v1535_v62 }
 0xc37   :  { %v1634_v14 = vmax.f32 %v1630_v6, 0.0 }
 0xc38   :  { %v1633_v10 = vmax.f32 %v1625_v53, 0.0 }
 0xc3a   :  { %3789 = vmatprep.mubr.msk.f32.mxu1 %vm126_vm0, %v1633_v10 }
 0xc3b   :  { %3790 = vmatmul.mubr.msk.f32.vlgmr.msra.gmra.mrb[14].mxu1 %vm126_vm0, %v1634_v14 }
 0xc3c   :  { %4070 = vmatpush3.bf16.msra.mxu1 %v4067_v3  ;;  %3811 = vmatprep.mubr.msk.f32.mxu1 %vm126_vm0, %v4662_v5  ;;  %v1638_v5 = vrot.slane %v4675_v12, %v1637_v16 }
 0xc3d   :  { %4072 = vmatprep.subr.bf16.mxu1 %v4071_v15 }
 0xc40   :  { %4074 = vmatpush3.bf16.msra.mxu1 %v4071_v15 }
 0xc43   :  { %3812 = vmatmul.mubr.msk.f32.vlgmr.msra.gmra.mrb[16].mxu1 %vm126_vm0, %v4686_v24  ;;  %v4902_v24 = vld [vmem:[%s5093_s4 + $0x8] sm:$0x3f]  ;;  %s4576_s4 = smov [#allocation8]  }
 0xc44   :  { %3814 = vmatprep.mubr.msk.f32.mxu1 %vm126_vm0, %v4691_v25  ;;  %v1935_v21 = vrot.slane %v4902_v24, %v323_v33  ;;  %v1749_v59 = vrot.slane %v4902_v24, %v124_v27  ;;  %v1943_v46 = vrot.slane %v4902_v24, %v331_v13  ;;  %s3351_s25 = sshll.u32 %s4576_s4, 4  ;;  %s3352_s25 = int_to_ptr.vmem [resolvable:$true] %s3351_s25 }
 0xc45   :  { %s4533_s26 = scalar_lea.vmem %s3352_s25, 256  ;;  %p4538_p11 = scmp.lt.s32.totalorder %s3352_s25, %s3352_s25 }
 0xc46   :  { %p4534_p10 = scmp.ne.s32.totalorder %s3352_s25, %s4533_s26  ;;  %p4539_p12 = scmp.lt.s32.totalorder %s4533_s26, %s4533_s26 }
 0xc47   :  { %3815 = vmatmul.mubr.msk.f32.gmra.mrb[18].mxu1 %vm126_vm0, %v4700_v26 }
 0xc48   :  { %p4540_p13 = por %p4539_p12, %p4538_p11 }
 0xc4a   :  { %p4541_p0 = pnand %p4540_p13, %p4534_p10 }
 0xd0e   :  { %v3791_v17 = vpop.f32.mrb[14].mxu1 }
 0xd0f   :  { %v1729_v18 = vadd.f32 %v3791_v17, %v1638_v5  ;;  %v1723_v19 = vpop.f32.mrb[15].mxu1 }
 0xd10   :  { %v1724_v20 = vadd.f32 %v1723_v19, %v1638_v5 }
 0xd11   :  { %v1733_v26 = vadd.f32 %v4171_v48, %v1729_v18 }
 0xd12   :  { %v1732_v25 = vadd.f32 %v4172_v32, %v1724_v20 }
 0xd14   :  { %3800 = vmatprep.mubr.msk.f32.mxu0 %vm126_vm0, %v1732_v25 }
 0xd15   :  { %3801 = vmatmul.mubr.msk.f32.vlgmr.msra.gmra.mrb[12].mxu0 %vm126_vm0, %v1733_v26 }
 0xd16   :  { %v3813_v12 = vpop.f32.mrb[16].mxu1 }
 0xd17   :  { %v1937_v22 = vadd.f32 %v3813_v12, %v1935_v21  ;;  %v1913_v31 = vpop.f32.mrb[17].mxu1 }
 0xd18   :  { %v1936_v23 = vadd.f32 %v1935_v21, %v1913_v31 }
 0xd1a   :  { %v4075_v28 = vpack.c.bf16 %v1937_v22, %v1936_v23  ;;  %v3816_v29 = vpop.f32.mrb[18].mxu1  ;;  %v4942_v13 = vpack.i.bf16 %v1937_v22, %v1936_v23 }
 0xd1b   :  { %v1939_v30 = vadd.f32 %v3816_v29, %v1935_v21  ;;  %v1923_v34 = vpop.f32.mrb[19].mxu1 }
 0xd1c   :  { %4077 = vmatprep.subr.msk.bf16.mxu0 %vm4720_vm2, %v4075_v28  ;;  %v1938_v35 = vadd.f32 %v1935_v21, %v1923_v34  ;;  %v4955_v21 = vld [vmem:[#allocation7 + $0x20] sm:$0xff] }
 0xd1d   :  { %4080 = vmatpush3.bf16.xpose.msk.msra.mxu0 %vm4720_vm2, %v4075_v28 }
 0xd1e   :  { %v4081_v33 = vpack.c.bf16 %v1939_v30, %v1938_v35  ;;  %v4328_v7 = vpack.i.bf16 %v1939_v30, %v1938_v35 }
 0xd20   :  { %4083 = vmatprep.subr.msk.bf16.mxu0 %vm4720_vm2, %v4081_v33 }
 0xd25   :  { %4086 = vmatpush3.bf16.xpose.msk.msra.mxu0 %vm4720_vm2, %v4081_v33 }
 0xde8   :  { %v3802_v37 = vpop.f32.mrb[12].mxu0 }
 0xde9   :  { %v1822_v38 = vpop.f32.mrb[13].mxu0  ;;  %v4922_v40 = vadd.f32 %v3802_v37, %v1749_v59 }
 0xdea   :  { %v4920_v39 = vadd.f32 %v1822_v38, %v1749_v59 }
 0xdec   :  { %3825 = vmatprep.mubr.msk.f32.mxu0 %vm345_vm1, %v4920_v39 }
 0xded   :  { %3826 = vmatmul.mubr.msk.f32.vlgmr.msra.gmra.mrb[14].mxu0 %vm345_vm1, %v4922_v40 }
 0xec0   :  { %v3827_v41 = vpop.f32.mrb[14].mxu0 }
 0xec1   :  { %v2046_v43 = vadd.f32 %v3827_v41, %v4747_v63  ;;  %v2040_v54 = vpop.f32.mrb[15].mxu0 }
 0xec2   :  { %v2041_v44 = vadd.f32 %v2040_v54, %v4745_v61 }
 0xec3   :  { %v2052_v27 = vsel %vm126_vm0, %v2046_v43, -inf }
 0xec4   :  { %2053 = vmax.xlane.f32.xlu0 %v2052_v27  ;;  %v2049_v47 = vsel %vm126_vm0, %v2041_v44, -inf }
 0xec5   :  { %2050 = vmax.xlane.f32.xlu1 %v2049_v47 }
 0xeda   :  { %1945 = vrot.lane.b32.xlu0 %v1943_v46, %s4567_s10 }
 0xf51   :  { %v2054_v32 = vpop.xlane.xlu0 %2053 }
 0xf52   :  { %v2056_v48 = vsub.f32 %v2046_v43, %v2054_v32  ;;  %v2051_v49 = vpop.xlane.xlu1 %2050 }
 0xf53   :  { %v2055_v50 = vsub.f32 %v2041_v44, %v2051_v49 }
 0xf54   :  { %v2059_v51 = vmul.f32 1.442695, %v2056_v48 }
 0xf55   :  { %v2057_v52 = vmul.f32 1.442695, %v2055_v50  ;;  %v1946_v55 = vpop.permute.xlu0 %1945 }
 0xf56   :  { %4435 = vpow2.f32 %v2059_v51  ;;  %v1948_v56 = vadd.f32 %v1946_v55, %v1913_v31  ;;  %v1949_v57 = vadd.f32 %v3813_v12, %v1946_v55  ;;  %v1950_v60 = vadd.f32 %v1946_v55, %v1923_v34 }
 0xf57   :  { %4437 = vpow2.f32 %v2057_v52  ;;  %v1951_v62 = vadd.f32 %v3816_v29, %v1946_v55 }
 0xf58   :  { %v4936_v0 = vpack.i.bf16 %v1949_v57, %v1948_v56 }
 0xf59   :  { %v4938_v1 = vpack.i.bf16 %v1951_v62, %v1950_v60 }
 0xf5b   :  { %4319 = vrot.lane.b32.xlu0 %v4938_v1, %s4566_s8 }
 0xf5f   :  { %4324 = vrot.lane.b32.xlu0 %v4942_v13, %s4569_s1 }
 0xf60   :  { %v4436_v2 = vpop.eup %4435 }
 0xf61   :  { %v4438_v3 = vpop.eup %4437  ;;  %v2064_v4 = vsel %vm126_vm0, %v4436_v2, 0.0 }
 0xf62   :  { %2065 = vadd.xlane.f32.xlu1 %v2064_v4  ;;  %v2061_v6 = vsel %vm126_vm0, %v4438_v3, 0.0 }
 0xf63   :  { %2251 = vrot.lane.b32.xlu0 %v4920_v39, %s4569_s1 }
 0xf66   :  { %2062 = vadd.xlane.f32.xlu1 %v2061_v6 }
 0xf77   :  { %4314 = vrot.lane.b32.xlu1 %v4936_v0, %s4566_s8 }
 0xf7b   :  { %4329 = vrot.lane.b32.xlu1 %v4328_v7, %s4569_s1 }
 0xf7f   :  { %2253 = vrot.lane.b32.xlu1 %v4922_v40, %s4569_s1 }
 0xfcd   :  { %v4320_v53 = vpop.permute.xlu0 %4319 }
 0xfce   :  { %v4322_v14 = vunpack.i.h.bf16 %v4320_v53  ;;  %v4321_v15 = vunpack.i.l.bf16 %v4320_v53 }
 0xfd0   :  { %v4091_v18 = vpack.c.bf16 %v4322_v14, %v4321_v15 }
 0xfd1   :  { %v4325_v19 = vpop.permute.xlu0 %4324 }
 0xfd2   :  { %v4327_v12 = vunpack.i.h.bf16 %v4325_v19  ;;  %v4326_v22 = vunpack.i.l.bf16 %v4325_v19 }
 0xfd4   :  { %v4095_v23 = vpack.c.bf16 %v4327_v12, %v4326_v22 }
 0xfd5   :  { %v2252_v33 = vpop.permute.xlu0 %2251 }
 0xfef   :  { %v2066_v8 = vpop.xlane.xlu1 %2065 }
 0xff3   :  { %v2063_v9 = vpop.xlane.xlu1 %2062 }
 0xff4   :  { %4439 = vrcp.f32 %v2063_v9 }
 0xff5   :  { %4441 = vrcp.f32 %v2066_v8 }
 0xff7   :  { %v4315_v10 = vpop.permute.xlu1 %4314 }
 0xff8   :  { %v4317_v45 = vunpack.i.h.bf16 %v4315_v10  ;;  %v4316_v5 = vunpack.i.l.bf16 %v4315_v10 }
 0xffa   :  { %v4087_v17 = vpack.c.bf16 %v4317_v45, %v4316_v5 }
 0xffb   :  { %v4330_v28 = vpop.permute.xlu1 %4329 }
 0xffc   :  { %4088 = vmatprep.subr.bf16.mxu1 %v4087_v17  ;;  %v4332_v29 = vunpack.i.h.bf16 %v4330_v28  ;;  %v4331_v30 = vunpack.i.l.bf16 %v4330_v28 }
 0xffd   :  { %4090 = vmatpush3.bf16.msra.mxu1 %v4087_v17 }
 0xffe   :  { %v4440_v20 = vpop.eup %4439  ;;  %4092 = vmatprep.subr.bf16.mxu1 %v4091_v18  ;;  %v4101_v59 = vpack.c.bf16 %v4332_v29, %v4331_v30 }
 0xfff   :  { %v4442_v25 = vpop.eup %4441  ;;  %v2069_v26 = vmul.f32 %v4440_v20, %v4438_v3  ;;  %v2254_v37 = vpop.permute.xlu1 %2253 }
0x1000   :  { %v2070_v31 = vmul.f32 %v4442_v25, %v4436_v2 }
0x1001   :  { %4094 = vmatpush3.bf16.msra.mxu1 %v4091_v18  ;;  %3836 = vmatprep.mubr.msk.f32.mxu1 %vm126_vm0, %v2069_v26 }
0x1002   :  { %3839 = vmatprep.subr.mxu1 %v4955_v21 }
0x1004   :  { %3837 = vmatmul.mubr.msk.f32.vlgmr.msra.gmra.mrb[20].mxu1 %vm126_vm0, %v2070_v31 }
0x1005   :  { %3840 = vmatpush3.msra.mxu1 %v4955_v21 }
0x1006   :  { %4097 = vmatprep.subr.msk.bf16.mxu1 %vm4720_vm2, %v4095_v23 }
0x10d7   :  { %v3838_v34 = vpop.f32.mrb[20].mxu1 }
0x10d8   :  { %v2159_v35 = vpop.f32.mrb[21].mxu1 }
0x10d9   :  { %3841 = vmatprep.mubr.msk.f32.mxu1 %vm345_vm1, %v2159_v35 }
0x10da   :  { %3842 = vmatmul.mubr.msk.f32.vlgmr.msra.gmra.mrb[22].mxu1 %vm345_vm1, %v3838_v34 }
0x10db   :  { %4100 = vmatpush3.bf16.xpose.msk.msra.mxu1 %vm4720_vm2, %v4095_v23  ;;  %3852 = vmatprep.mubr.msk.f32.mxu1 %vm345_vm1, %v2252_v33  ;;  %v5019_v33 = vld [vmem:[#allocation7 + $0x28] sm:$0xff] }
0x10dc   :  { %4103 = vmatprep.subr.msk.bf16.mxu1 %vm4720_vm2, %v4101_v59 }
0x10e3   :  { %4106 = vmatpush3.bf16.xpose.msk.msra.mxu1 %vm4720_vm2, %v4101_v59 }
0x10e4   :  { %3866 = vmatprep.subr.mxu1 %v5019_v33 }
0x10ea   :  { %3853 = vmatmul.mubr.msk.f32.vlgmr.msra.gmra.mrb[24].mxu1 %vm345_vm1, %v2254_v37 }
0x10eb   :  { %3867 = vmatpush3.msra.mxu1 %v5019_v33 }
0x11bd   :  { %v3854_v38 = vpop.f32.mrb[24].mxu1 }
0x11be   :  { %v2347_v41 = vadd.f32 %v3854_v38, %v4747_v63  ;;  %v2341_v43 = vpop.f32.mrb[25].mxu1 }
0x11bf   :  { %v2342_v54 = vadd.f32 %v2341_v43, %v4745_v61 }
0x11c0   :  { %v2353_v44 = vsel %vm126_vm0, %v2347_v41, -inf }
0x11c1   :  { %2354 = vmax.xlane.f32.xlu1 %v2353_v44  ;;  %v2350_v27 = vsel %vm126_vm0, %v2342_v54, -inf }
0x11c2   :  { %2351 = vmax.xlane.f32.xlu0 %v2350_v27 }
0x11d2   :  { %4334 = vrot.lane.b32.xlu1 %v4936_v0, %s4570_s2 }
0x11d6   :  { %4344 = vrot.lane.b32.xlu1 %v4942_v13, %s4571_s17 }
0x11da   :  { %4349 = vrot.lane.b32.xlu1 %v4328_v7, %s4571_s17 }
0x11de   :  { %2550 = vrot.lane.b32.xlu1 %v4922_v40, %s4571_s17 }
0x11e2   :  { %4359 = vrot.lane.b32.xlu1 %v4328_v7, %s4572_s18 }
0x11e6   :  { %2847 = vrot.lane.b32.xlu1 %v4922_v40, %s4572_s18 }
0x124e   :  { %v2355_v47 = vpop.xlane.xlu1 %2354 }
0x124f   :  { %v2357_v46 = vsub.f32 %v2347_v41, %v2355_v47  ;;  %v2352_v32 = vpop.xlane.xlu0 %2351 }
0x1250   :  { %v2356_v48 = vsub.f32 %v2342_v54, %v2352_v32 }
0x1251   :  { %v2360_v49 = vmul.f32 1.442695, %v2357_v46 }
0x1252   :  { %v2358_v50 = vmul.f32 1.442695, %v2356_v48  ;;  %v4335_v51 = vpop.permute.xlu1 %4334 }
0x1253   :  { %4443 = vpow2.f32 %v2360_v49  ;;  %v4337_v52 = vunpack.i.h.bf16 %v4335_v51  ;;  %v4336_v55 = vunpack.i.l.bf16 %v4335_v51 }
0x1254   :  { %4445 = vpow2.f32 %v2358_v50 }
0x1255   :  { %v4107_v56 = vpack.c.bf16 %v4337_v52, %v4336_v55 }
0x1256   :  { %v4345_v4 = vpop.permute.xlu1 %4344 }
0x1257   :  { %4108 = vmatprep.subr.bf16.mxu0 %v4107_v56  ;;  %v4347_v7 = vunpack.i.h.bf16 %v4345_v4  ;;  %v4346_v8 = vunpack.i.l.bf16 %v4345_v4 }
0x1258   :  { %4110 = vmatpush3.bf16.msra.mxu0 %v4107_v56 }
0x1259   :  { %v4115_v14 = vpack.c.bf16 %v4347_v7, %v4346_v8 }
0x125d   :  { %v4444_v57 = vpop.eup %4443 }
0x125e   :  { %v2365_v60 = vsel %vm126_vm0, %v4444_v57, 0.0  ;;  %v4446_v62 = vpop.eup %4445 }
0x125f   :  { %2366 = vadd.xlane.f32.xlu0 %v2365_v60  ;;  %v2362_v40 = vsel %vm126_vm0, %v4446_v62, 0.0 }
0x1263   :  { %2363 = vadd.xlane.f32.xlu0 %v2362_v40 }
0x1279   :  { %4339 = vrot.lane.b32.xlu0 %v4938_v1, %s4570_s2 }
0x127d   :  { %2548 = vrot.lane.b32.xlu0 %v4920_v39, %s4571_s17 }
0x1281   :  { %4354 = vrot.lane.b32.xlu0 %v4942_v13, %s4572_s18  ;;  %v4350_v13 = vpop.permute.xlu1 %4349 }
0x1282   :  { %v4352_v18 = vunpack.i.h.bf16 %v4350_v13  ;;  %v4351_v19 = vunpack.i.l.bf16 %v4350_v13 }
0x1284   :  { %v4121_v20 = vpack.c.bf16 %v4352_v18, %v4351_v19 }
0x1285   :  { %2845 = vrot.lane.b32.xlu0 %v4920_v39, %s4572_s18  ;;  %v2551_v26 = vpop.permute.xlu1 %2550 }
0x1289   :  { %v4360_v23 = vpop.permute.xlu1 %4359 }
0x128a   :  { %v4362_v28 = vunpack.i.h.bf16 %v4360_v23  ;;  %v4361_v29 = vunpack.i.l.bf16 %v4360_v23 }
0x128c   :  { %v4141_v30 = vpack.c.bf16 %v4362_v28, %v4361_v29 }
0x128d   :  { %v2848_v35 = vpop.permute.xlu1 %2847 }
0x12ec   :  { %v2367_v2 = vpop.xlane.xlu0 %2366 }
0x12ed   :  { %4447 = vrcp.f32 %v2367_v2 }
0x12f0   :  { %v2364_v3 = vpop.xlane.xlu0 %2363 }
0x12f1   :  { %4449 = vrcp.f32 %v2364_v3 }
0x12f4   :  { %v4340_v6 = vpop.permute.xlu0 %4339 }
0x12f5   :  { %v4342_v9 = vunpack.i.h.bf16 %v4340_v6  ;;  %v4341_v53 = vunpack.i.l.bf16 %v4340_v6 }
0x12f7   :  { %v4111_v10 = vpack.c.bf16 %v4342_v9, %v4341_v53  ;;  %v4448_v15 = vpop.eup %4447 }
0x12f8   :  { %v2371_v5 = vmul.f32 %v4448_v15, %v4444_v57  ;;  %v2549_v17 = vpop.permute.xlu0 %2548 }
0x12f9   :  { %4112 = vmatprep.subr.bf16.mxu0 %v4111_v10 }
0x12fa   :  { %4114 = vmatpush3.bf16.msra.mxu0 %v4111_v10 }
0x12fb   :  { %v4450_v45 = vpop.eup %4449  ;;  %4117 = vmatprep.subr.msk.bf16.mxu0 %vm4720_vm2, %v4115_v14 }
0x12fc   :  { %v2370_v39 = vmul.f32 %v4450_v45, %v4446_v62  ;;  %v4355_v25 = vpop.permute.xlu0 %4354 }
0x12fd   :  { %v4357_v12 = vunpack.i.h.bf16 %v4355_v25  ;;  %v4356_v22 = vunpack.i.l.bf16 %v4355_v25 }
0x12fe   :  { %3863 = vmatprep.mubr.msk.f32.mxu0 %vm126_vm0, %v2370_v39 }
0x12ff   :  { %3864 = vmatmul.mubr.msk.f32.vlgmr.msra.gmra.mrb[16].mxu0 %vm126_vm0, %v2371_v5  ;;  %v4135_v31 = vpack.c.bf16 %v4357_v12, %v4356_v22 }
0x1300   :  { %3879 = vmatprep.mubr.msk.f32.mxu0 %vm345_vm1, %v2549_v17  ;;  %v2846_v34 = vpop.permute.xlu0 %2845  ;;  %v1742_v17 = vld [vmem:[#allocation7 + $0x30] sm:$0xff] }
0x1303   :  { %4120 = vmatpush3.bf16.xpose.msk.msra.mxu0 %vm4720_vm2, %v4115_v14 }
0x1304   :  { %4123 = vmatprep.subr.msk.bf16.mxu0 %vm4720_vm2, %v4121_v20 }
0x130b   :  { %4126 = vmatpush3.bf16.xpose.msk.msra.mxu0 %vm4720_vm2, %v4121_v20 }
0x130c   :  { %4137 = vmatprep.subr.msk.bf16.mxu0 %vm4720_vm2, %v4135_v31 }
0x1312   :  { %3880 = vmatmul.mubr.msk.f32.vlgmr.msra.gmra.mrb[18].mxu0 %vm345_vm1, %v2551_v26 }
0x1313   :  { %4140 = vmatpush3.bf16.xpose.msk.msra.mxu0 %vm4720_vm2, %v4135_v31  ;;  %3906 = vmatprep.mubr.msk.f32.mxu0 %vm345_vm1, %v2846_v34 }
0x1314   :  { %4143 = vmatprep.subr.msk.bf16.mxu0 %vm4720_vm2, %v4141_v30 }
0x131b   :  { %4146 = vmatpush3.bf16.xpose.msk.msra.mxu0 %vm4720_vm2, %v4141_v30 }
0x1322   :  { %3907 = vmatmul.mubr.msk.f32.vlgmr.msra.gmra.mrb[20].mxu0 %vm345_vm1, %v2848_v35 }
0x13d2   :  { %v3865_v59 = vpop.f32.mrb[16].mxu0 }
0x13d3   :  { %v2456_v37 = vpop.f32.mrb[17].mxu0 }
0x13d4   :  { %3868 = vmatprep.mubr.msk.f32.mxu1 %vm345_vm1, %v2456_v37 }
0x13d5   :  { %3869 = vmatmul.mubr.msk.f32.vlgmr.msra.gmra.mrb[22].mxu1 %vm345_vm1, %v3865_v59 }
0x13e5   :  { %v3881_v38 = vpop.f32.mrb[18].mxu0 }
0x13e6   :  { %v2644_v41 = vadd.f32 %v3881_v38, %v4747_v63  ;;  %v2638_v42 = vpop.f32.mrb[19].mxu0 }
0x13e7   :  { %v2639_v43 = vadd.f32 %v2638_v42, %v4745_v61 }
0x13e8   :  { %v2650_v54 = vsel %vm126_vm0, %v2644_v41, -inf }
0x13e9   :  { %2651 = vmax.xlane.f32.xlu1 %v2650_v54  ;;  %v2647_v44 = vsel %vm126_vm0, %v2639_v43, -inf }
0x13ea   :  { %2648 = vmax.xlane.f32.xlu0 %v2647_v44  ;;  %v1743_v44 = vld [vmem:[#allocation7 + $0x38] sm:$0xff] }
0x13f5   :  { %v3908_v27 = vpop.f32.mrb[20].mxu0 }
0x13f6   :  { %v2935_v47 = vpop.f32.mrb[21].mxu0  ;;  %v2941_v9 = vadd.f32 %v3908_v27, %v4747_v63 }
0x13f7   :  { %v2936_v46 = vadd.f32 %v2935_v47, %v4745_v61  ;;  %v4383_v47 = vpack.i.bf16 %v5019_v33, %v4955_v21 }
0x13f8   :  { %v2947_v10 = vsel %vm126_vm0, %v2941_v9, -inf }
0x13f9   :  { %v2944_v32 = vsel %vm126_vm0, %v2936_v46, -inf }
0x13fa   :  { %4364 = vrot.lane.b32.xlu1 %v4936_v0, %s4573_s19 }
0x141e   :  { %2945 = vmax.xlane.f32.xlu1 %v2944_v32 }
0x1476   :  { %v2652_v48 = vpop.xlane.xlu1 %2651 }
0x1477   :  { %v2654_v49 = vsub.f32 %v2644_v41, %v2652_v48  ;;  %v2649_v50 = vpop.xlane.xlu0 %2648 }
0x1478   :  { %v2653_v51 = vsub.f32 %v2639_v43, %v2649_v50 }
0x1479   :  { %v2657_v52 = vmul.f32 1.442695, %v2654_v49 }
0x147a   :  { %v2655_v55 = vmul.f32 1.442695, %v2653_v51  ;;  %v4365_v56 = vpop.permute.xlu1 %4364 }
0x147b   :  { %4451 = vpow2.f32 %v2657_v52  ;;  %v4367_v57 = vunpack.i.h.bf16 %v4365_v56  ;;  %v4366_v60 = vunpack.i.l.bf16 %v4365_v56 }
0x147c   :  { %4453 = vpow2.f32 %v2655_v55 }
0x147d   :  { %v4127_v62 = vpack.c.bf16 %v4367_v57, %v4366_v60 }
0x147f   :  { %4128 = vmatprep.subr.bf16.mxu1 %v4127_v62 }
0x1480   :  { %4130 = vmatpush3.bf16.msra.mxu1 %v4127_v62 }
0x1485   :  { %v4452_v40 = vpop.eup %4451 }
0x1486   :  { %v2662_v61 = vsel %vm126_vm0, %v4452_v40, 0.0  ;;  %v4454_v2 = vpop.eup %4453 }
0x1487   :  { %2663 = vadd.xlane.f32.xlu0 %v2662_v61  ;;  %v2659_v3 = vsel %vm126_vm0, %v4454_v2, 0.0 }
0x148b   :  { %2660 = vadd.xlane.f32.xlu0 %v2659_v3 }
0x14a1   :  { %4369 = vrot.lane.b32.xlu0 %v4938_v1, %s4573_s19 }
0x14ab   :  { %v2946_v4 = vpop.xlane.xlu1 %2945 }
0x14ac   :  { %v2950_v6 = vsub.f32 %v2936_v46, %v2946_v4  ;;  %v4388_v46 = vpack.i.bf16 %v1743_v44, %v1742_v17 }
0x14ae   :  { %v2952_v7 = vmul.f32 1.442695, %v2950_v6  ;;  %v1955_v6 = vrot.slane %v4902_v24, %v343_v36 }
0x14b0   :  { %4455 = vpow2.f32 %v2952_v7 }
0x14ba   :  { %v4456_v8 = vpop.eup %4455 }
0x14bb   :  { %v2956_v53 = vsel %vm126_vm0, %v4456_v8, 0.0 }
0x14bc   :  { %2957 = vadd.xlane.f32.xlu1 %v2956_v53 }
0x14c0   :  { %2948 = vmax.xlane.f32.xlu0 %v2947_v10  ;;  %v3145_v10 = vrot.slane %v4902_v24, %v1534_v58 }
0x14cd   :  { %4374 = vrot.lane.b32.xlu1 %v4936_v0, %s4574_s20 }
0x14d1   :  { %4384 = vrot.lane.b32.xlu1 %v4383_v47, %s4566_s8 }
0x14d5   :  { %4389 = vrot.lane.b32.xlu1 %v4388_v46, %s4566_s8 }
0x14d9   :  { %4399 = vrot.lane.b32.xlu1 %v4388_v46, %s4575_s22 }
0x1514   :  { %v2664_v14 = vpop.xlane.xlu0 %2663 }
0x1515   :  { %4457 = vrcp.f32 %v2664_v14 }
0x1518   :  { %v2661_v15 = vpop.xlane.xlu0 %2660 }
0x1519   :  { %4459 = vrcp.f32 %v2661_v15 }
0x151c   :  { %v4370_v45 = vpop.permute.xlu0 %4369 }
0x151d   :  { %v4372_v13 = vunpack.i.h.bf16 %v4370_v45  ;;  %v4371_v39 = vunpack.i.l.bf16 %v4370_v45 }
0x151f   :  { %v4131_v5 = vpack.c.bf16 %v4372_v13, %v4371_v39  ;;  %v4458_v63 = vpop.eup %4457 }
0x1520   :  { %v2668_v20 = vmul.f32 %v4458_v63, %v4452_v40 }
0x1521   :  { %4132 = vmatprep.subr.bf16.mxu1 %v4131_v5 }
0x1522   :  { %4134 = vmatpush3.bf16.msra.mxu1 %v4131_v5  ;;  %v3248_v5 = vrot.slane %v4902_v24, %v1637_v16 }
0x1523   :  { %v4460_v18 = vpop.eup %4459  ;;  %3893 = vmatprep.subr.mxu1 %v1742_v17 }
0x1524   :  { %v2667_v19 = vmul.f32 %v4460_v18, %v4454_v2 }
0x1526   :  { %3890 = vmatprep.mubr.msk.f32.mxu1 %vm126_vm0, %v2667_v19 }
0x1527   :  { %3891 = vmatmul.mubr.msk.f32.vlgmr.msra.gmra.mrb[26].mxu1 %vm126_vm0, %v2668_v20 }
0x1528   :  { %3894 = vmatpush3.msra.mxu1 %v1742_v17 }
0x1549   :  { %v2958_v0 = vpop.xlane.xlu1 %2957 }
0x154d   :  { %v4375_v25 = vpop.permute.xlu1 %4374  ;;  %v2949_v26 = vpop.xlane.xlu0 %2948 }
0x154e   :  { %v4377_v12 = vunpack.i.h.bf16 %v4375_v25  ;;  %v4376_v22 = vunpack.i.l.bf16 %v4375_v25  ;;  %v2951_v31 = vsub.f32 %v2941_v9, %v2949_v26 }
0x1550   :  { %v4147_v23 = vpack.c.bf16 %v4377_v12, %v4376_v22  ;;  %v2954_v28 = vmul.f32 1.442695, %v2951_v31 }
0x1551   :  { %v4385_v32 = vpop.permute.xlu1 %4384 }
0x1552   :  { %4461 = vpow2.f32 %v2954_v28  ;;  %4148 = vmatprep.subr.bf16.mxu1 %v4147_v23  ;;  %v4387_v48 = vunpack.i.h.bf16 %v4385_v32  ;;  %v4386_v49 = vunpack.i.l.bf16 %v4385_v32 }
0x1553   :  { %4463 = vrcp.f32 %v2958_v0 }
0x1554   :  { %v4155_v50 = vpack.c.bf16 %v4387_v48, %v4386_v49 }
0x1555   :  { %v4390_v51 = vpop.permute.xlu1 %4389 }
0x1556   :  { %v4392_v52 = vunpack.i.h.bf16 %v4390_v51  ;;  %v4391_v55 = vunpack.i.l.bf16 %v4390_v51  ;;  %4156 = vmatprep.subr.bf16.mxu0 %v4155_v50 }
0x1557   :  { %4158 = vmatpush3.bf16.msra.mxu0 %v4155_v50 }
0x1558   :  { %v4159_v56 = vpack.c.bf16 %v4392_v52, %v4391_v55 }
0x1559   :  { %v4400_v33 = vpop.permute.xlu1 %4399 }
0x155a   :  { %4160 = vmatprep.subr.bf16.mxu0 %v4159_v56  ;;  %v4402_v61 = vunpack.i.h.bf16 %v4400_v33  ;;  %v4401_v2 = vunpack.i.l.bf16 %v4400_v33 }
0x155b   :  { %4162 = vmatpush3.bf16.msra.mxu0 %v4159_v56 }
0x155c   :  { %v4462_v29 = vpop.eup %4461  ;;  %v4167_v4 = vpack.c.bf16 %v4402_v61, %v4401_v2 }
0x155d   :  { %v2959_v30 = vsel %vm126_vm0, %v4462_v29, 0.0  ;;  %v4464_v59 = vpop.eup %4463 }
0x155e   :  { %2960 = vadd.xlane.f32.xlu0 %v2959_v30  ;;  %v2964_v43 = vmul.f32 %v4464_v59, %v4456_v8 }
0x1574   :  { %4379 = vrot.lane.b32.xlu0 %v4938_v1, %s4574_s20 }
0x1578   :  { %4394 = vrot.lane.b32.xlu0 %v4383_v47, %s4575_s22 }
0x15eb   :  { %v2961_v34 = vpop.xlane.xlu0 %2960 }
0x15ec   :  { %4465 = vrcp.f32 %v2961_v34 }
0x15ef   :  { %v4380_v35 = vpop.permute.xlu0 %4379 }
0x15f0   :  { %v4382_v37 = vunpack.i.h.bf16 %v4380_v35  ;;  %v4381_v38 = vunpack.i.l.bf16 %v4380_v35 }
0x15f2   :  { %v4151_v54 = vpack.c.bf16 %v4382_v37, %v4381_v38 }
0x15f3   :  { %v4395_v21 = vpop.permute.xlu0 %4394 }
0x15f4   :  { %v4397_v62 = vunpack.i.h.bf16 %v4395_v21  ;;  %v4396_v40 = vunpack.i.l.bf16 %v4395_v21 }
0x15f6   :  { %v4466_v1 = vpop.eup %4465  ;;  %v4163_v3 = vpack.c.bf16 %v4397_v62, %v4396_v40 }
0x15f7   :  { %v2965_v27 = vmul.f32 %v4466_v1, %v4462_v29 }
0x15fa   :  { %v3892_v41 = vpop.f32.mrb[26].mxu1 }
0x15fb   :  { %v2753_v42 = vpop.f32.mrb[27].mxu1 }
0x15fc   :  { %3895 = vmatprep.mubr.msk.f32.mxu1 %vm345_vm1, %v2753_v42 }
0x15fd   :  { %3896 = vmatmul.mubr.msk.f32.vlgmr.msra.gmra.mrb[22].mxu1 %vm345_vm1, %v3892_v41 }
0x15fe   :  { %4150 = vmatpush3.bf16.msra.mxu1 %v4147_v23  ;;  %3917 = vmatprep.mubr.msk.f32.mxu1 %vm126_vm0, %v2964_v43 }
0x15ff   :  { %4152 = vmatprep.subr.bf16.mxu1 %v4151_v54 }
0x1602   :  { %4154 = vmatpush3.bf16.msra.mxu1 %v4151_v54 }
0x1603   :  { %3920 = vmatprep.subr.mxu1 %v1743_v44 }
0x1605   :  { %3918 = vmatmul.mubr.msk.f32.vlgmr.msra.gmra.mrb[28].mxu1 %vm126_vm0, %v2965_v27 }
0x1606   :  { %3921 = vmatpush3.msra.mxu1 %v1743_v44 }
0x1607   :  { %4164 = vmatprep.subr.bf16.mxu1 %v4163_v3 }
0x16d8   :  { %v3919_v57 = vpop.f32.mrb[28].mxu1 }
0x16d9   :  { %v3050_v60 = vpop.f32.mrb[29].mxu1 }
0x16da   :  { %3922 = vmatprep.mubr.msk.f32.mxu1 %vm345_vm1, %v3050_v60 }
0x16db   :  { %3923 = vmatmul.mubr.msk.f32.vlgmr.msra.gmra.mrb[22].mxu1 %vm345_vm1, %v3919_v57 }
0x16dc   :  { %4166 = vmatpush3.bf16.msra.mxu1 %v4163_v3 }
0x16dd   :  { %4168 = vmatprep.subr.bf16.mxu1 %v4167_v4 }
0x16e0   :  { %4170 = vmatpush3.bf16.msra.mxu1 %v4167_v4 }
0x17ae   :  { %v3924_v7 = vpop.f32.mrb[22].mxu1 }
0x17af   :  { %v3131_v8 = vpop.f32.mrb[23].mxu1  ;;  %v4173_v53 = vadd.f32 %v3924_v7, %v1955_v6 }
0x17b0   :  { %v4174_v9 = vadd.f32 %v3131_v8, %v1955_v6 }
0x17b2   :  { %3933 = vmatprep.mubr.msk.f32.mxu0 %vm126_vm0, %v4174_v9 }
0x17b3   :  { %3934 = vmatmul.mubr.msk.f32.vlgmr.msra.gmra.mrb[22].mxu0 %vm126_vm0, %v4173_v53 }
0x1886   :  { %v3935_v14 = vpop.f32.mrb[22].mxu0 }
0x1887   :  { %v3240_v15 = vadd.f32 %v3935_v14, %v3145_v10  ;;  %v3234_v45 = vpop.f32.mrb[23].mxu0 }
0x1888   :  { %v3235_v36 = vadd.f32 %v3234_v45, %v3145_v10 }
0x1889   :  { %v3244_v39 = vmax.f32 %v3240_v15, 0.0 }
0x188a   :  { %v3243_v13 = vmax.f32 %v3235_v36, 0.0 }
0x188c   :  { %3944 = vmatprep.mubr.msk.f32.mxu1 %vm126_vm0, %v3243_v13 }
0x188d   :  { %3945 = vmatmul.mubr.msk.f32.vlgmr.msra.gmra.mrb[30].mxu1 %vm126_vm0, %v3244_v39 }
0x1960   :  { %v3946_v17 = vpop.f32.mrb[30].mxu1 }
0x1961   :  { %v3339_v63 = vadd.f32 %v3946_v17, %v3248_v5  ;;  %v3333_v18 = vpop.f32.mrb[31].mxu1 }
0x1962   :  { %v3334_v58 = vadd.f32 %v3333_v18, %v3248_v5 }
0x1963   :  { %v3343_v19 = vadd.f32 %v4173_v53, %v3339_v63 }
0x1964   :  { %v3342_v20 = vadd.f32 %v4174_v9, %v3334_v58 }
0x1965   :  { %3345 = vst.msk [vmem:[#allocation8 + $0x8] sm:$0xff] %vm126_vm0, %v3343_v19 }
0x1966   :  { %3344 = vst.msk [vmem:[#allocation8] sm:$0xff] %vm126_vm0, %v3342_v20 }
0x1967   :  { %4544 = shalt.err (!%p4541_p0)
}
0x1968   :  { %s4545_s0 = scalar_lea.hbm %s5094_s5, 256 }
0x1969   :  { %p4546_p1 = scmp.ne.s32.totalorder %s5094_s5, %s4545_s0  ;;  %p4549_p2 = scmp.lt.u32.totalorder %s4545_s0, %s5094_s5 }
0x196b   :  { %p4551_p3 = pnand %p4549_p2, %p4546_p1 }
0x196d   :  { %4554 = shalt.err (!%p4551_p3)
}
0x196e   :  { %3357 = dma.vmem_to_hbm [thread:$0]  %s3352_s25, 256, %s5094_s5, [#allocation4], %s4563_s30, %s4563_s30, %s4564_s6  }
0x196f   :  { %4559 = dma.done.wait [#allocation4], 256  }
0x1970   :  { %4560 = vsyncadd [#allocation4], 4294967040 }
0x1971   :  { %3361 = vsyncpa [#allocation3], 1 }
0x1972   :  { %3362 = vsyncpa [#allocation6], 1 }
0x1973   :  { %3363 = vsyncpa [#allocation4], 1 }

</bundles_post_ra>
